<compile_context>
chip_gen: v7x
topology: tpu7x:2x2x1
jax: 0.10.0
libtpu: 0.0.40
codegen_flags: <defaults>
</compile_context>

<pallas_src>
import functools

import jax
import jax.numpy as jnp
from jax import lax
from jax.experimental import pallas as pl
from jax.experimental.pallas import tpu as pltpu

# ------------------------- configuration (small synthetic shapes) ----------
B = 2              # batch
C_IN = 4           # image channels fed to shared conv
H = W = 8
S = H * W          # spatial positions
DIM_V = 32         # opt['dim_v']
DIM_Q = 32         # seq2vec output dim
DIM_ATT = 32       # attention hidden dim
NB_GLIMPSES = 2    # opt['attention']['nb_glimpses']
DIM_H = 32         # opt['vqa']['fusion']['dim_h']
GH = NB_GLIMPSES * DIM_H           # 64
VOCAB_WORDS = 128  # decoder vocab (lane-dense logits)
VOCAB_ANSWERS = 12 # num_classes
T = 8              # question length
TM1 = T - 1
DIM_DEC = 32       # vqg decoder hidden dim

# dot_general contracting dim 0 of both operands (p^T @ v without a transpose)
TN_DIM_NUMBERS = (((0,), (0,)), ((), ()))


# ------------------------- kernel 1: conv + attention + fusion + classify --
def _vqa_kernel(x_ref, q_ref, convw_ref, convb_ref, wv_ref, wq_ref, watt_ref,
                wfb_ref, bfb_ref, wqf_ref, bqf_ref, wct_ref, bc_ref,
                xv_ref, ans_ref):
    x = x_ref[0]                                        # (S, C_IN)
    q = q_ref[0]                                        # (1, DIM_Q)

    # shared_conv_layer: 1x1 conv == per-position matmul (stays in VMEM)
    v = (jnp.dot(x, convw_ref[...], preferred_element_type=jnp.float32)
         + convb_ref[...])                              # (S, DIM_V)

    # MLB-style glimpse attention
    h = jnp.tanh(
        jnp.dot(v, wv_ref[...], preferred_element_type=jnp.float32)
        + jnp.dot(q, wq_ref[...], preferred_element_type=jnp.float32))  # (S, DIM_ATT)
    scores = jnp.dot(h, watt_ref[...],
                     preferred_element_type=jnp.float32)                # (S, G)
    scores = scores - jnp.max(scores, axis=0, keepdims=True)
    e = jnp.exp(scores)
    p = e * pl.reciprocal(jnp.sum(e, axis=0, keepdims=True), approx=True)

    # glimpse-pooled features: contract over S, no explicit transpose
    att_v = lax.dot_general(p, v, TN_DIM_NUMBERS,
                            preferred_element_type=jnp.float32)         # (G, DIM_V)
    # flatten glimpses to (1, G*DIM_V) and apply ONE block-diagonal fusion matmul
    # TODO(synk): F.dropout(p=dropout_v) omitted (eval-mode identity).
    att_flat = jnp.concatenate(
        [att_v[g:g + 1, :] for g in range(NB_GLIMPSES)], axis=1)        # (1, G*DIM_V)
    xv = jnp.tanh(
        jnp.dot(att_flat, wfb_ref[...], preferred_element_type=jnp.float32)
        + bfb_ref[...])                                                 # (1, GH)
    xv_ref[0] = xv

    # vqa_module: elementwise fusion with projected question + linear_classif
    xq = jnp.tanh(
        jnp.dot(q, wqf_ref[...], preferred_element_type=jnp.float32)
        + bqf_ref[...])                                                 # (1, GH)
    z = xv * xq
    ans_ref[0] = (jnp.dot(z, wct_ref[...], preferred_element_type=jnp.float32)
                  + bc_ref[...])                                        # (1, A)


def vqa_forward(x_cl, q_vec, params):
    xv, ans = pl.pallas_call(
        _vqa_kernel,
        out_shape=(jax.ShapeDtypeStruct((B, 1, GH), jnp.float32),
                   jax.ShapeDtypeStruct((B, 1, VOCAB_ANSWERS), jnp.float32)),
        grid=(B,),
        in_specs=[
            pl.BlockSpec((1, S, C_IN), lambda b: (b, 0, 0)),      # image (per batch)
            pl.BlockSpec((1, 1, DIM_Q), lambda b: (b, 0, 0)),     # q_vec (per-row DMA)
            pl.BlockSpec((C_IN, DIM_V), lambda b: (0, 0)),        # conv_w
            pl.BlockSpec((1, DIM_V), lambda b: (0, 0)),           # conv_b
            pl.BlockSpec((DIM_V, DIM_ATT), lambda b: (0, 0)),     # att_wv
            pl.BlockSpec((DIM_Q, DIM_ATT), lambda b: (0, 0)),     # att_wq
            pl.BlockSpec((DIM_ATT, NB_GLIMPSES), lambda b: (0, 0)),  # att_w
            pl.BlockSpec((NB_GLIMPSES * DIM_V, GH), lambda b: (0, 0)),  # wf_block
            pl.BlockSpec((1, GH), lambda b: (0, 0)),              # bf
            pl.BlockSpec((DIM_Q, GH), lambda b: (0, 0)),          # wqf
            pl.BlockSpec((1, GH), lambda b: (0, 0)),              # bqf
            pl.BlockSpec((GH, VOCAB_ANSWERS), lambda b: (0, 0)),  # wc_t (pre-transposed)
            pl.BlockSpec((1, VOCAB_ANSWERS), lambda b: (0, 0)),   # bc
        ],
        out_specs=[pl.BlockSpec((1, 1, GH), lambda b: (b, 0, 0)),
                   pl.BlockSpec((1, 1, VOCAB_ANSWERS), lambda b: (b, 0, 0))],
        compiler_params=pltpu.CompilerParams(dimension_semantics=("parallel",)),
    )(x_cl, q_vec, params['conv_w'], params['conv_b'], params['att_wv'],
      params['att_wq'], params['att_w'], params['wf_block'], params['bf'],
      params['wqf'], params['bqf'], params['wc_t'], params['bc'])
    return xv.reshape(B, GH), ans.reshape(B, VOCAB_ANSWERS)


# ------------------------- kernel 2: vqg decoder + masked cross entropy ----
def _vqg_loss_kernel(xva_ref, xe_ref, tgt_ref, mask_ref,
                     wva_ref, w3_ref, b_ref, wout_ref, bout_ref,
                     q_out_ref, loss_ref):
    xva = xva_ref[0]                                    # (1, 2*GH) = [xv | x_a]
    xe = xe_ref[0]                                      # (T-1, DIM_Q)

    # batch-invariant part of the decoder input computed once per batch
    static = (jnp.dot(xva, wva_ref[...], preferred_element_type=jnp.float32)
              + b_ref[...])                             # (1, DIM_DEC)
    h = jnp.tanh(
        jnp.dot(xe, w3_ref[...], preferred_element_type=jnp.float32)
        + static)                                       # (T-1, DIM_DEC)
    logits = (jnp.dot(h, wout_ref[...], preferred_element_type=jnp.float32)
              + bout_ref[...])                          # (T-1, V)
    q_out_ref[0] = logits

    # per-sample length-masked cross entropy (one-hot built in-kernel via iota)
    m = jnp.max(logits, axis=-1, keepdims=True)
    lse = jnp.log(jnp.sum(jnp.exp(logits - m), axis=-1, keepdims=True)) + m  # (T-1, 1)
    tgt = tgt_ref[0]                                    # (T-1, 1) int32
    iota = lax.broadcasted_iota(jnp.int32, logits.shape, 1)
    onehot = (iota == tgt).astype(jnp.float32)          # (T-1, V)
    nll = lse - jnp.sum(logits * onehot, axis=-1, keepdims=True)          # (T-1, 1)
    mask = mask_ref[0]                                  # (T-1, 1)
    num = jnp.sum(nll * mask, axis=0, keepdims=True)    # (1, 1)
    den = jnp.maximum(jnp.sum(mask, axis=0, keepdims=True), 1.0)
    loss_ref[0] = num / den


def vqg_and_loss(xva, emb_prev, tgt, mask, params):
    q_logits, loss = pl.pallas_call(
        _vqg_loss_kernel,
        out_shape=(jax.ShapeDtypeStruct((B, TM1, VOCAB_WORDS), jnp.float32),
                   jax.ShapeDtypeStruct((B, 1, 1), jnp.float32)),
        grid=(B,),
        in_specs=[
            pl.BlockSpec((1, 1, 2 * GH), lambda b: (b, 0, 0)),    # [xv | x_a]
            pl.BlockSpec((1, TM1, DIM_Q), lambda b: (b, 0, 0)),   # prev-token embeddings
            pl.BlockSpec((1, TM1, 1), lambda b: (b, 0, 0)),       # next-token targets
            pl.BlockSpec((1, TM1, 1), lambda b: (b, 0, 0)),       # length mask
            pl.BlockSpec((2 * GH, DIM_DEC), lambda b: (0, 0)),    # stacked [w1; w2]
            pl.BlockSpec((DIM_Q, DIM_DEC), lambda b: (0, 0)),     # w3
            pl.BlockSpec((1, DIM_DEC), lambda b: (0, 0)),         # b
            pl.BlockSpec((DIM_DEC, VOCAB_WORDS), lambda b: (0, 0)),  # wout
            pl.BlockSpec((1, VOCAB_WORDS), lambda b: (0, 0)),     # bout
        ],
        out_specs=[pl.BlockSpec((1, TM1, VOCAB_WORDS), lambda b: (b, 0, 0)),
                   pl.BlockSpec((1, 1, 1), lambda b: (b, 0, 0))],
        compiler_params=pltpu.CompilerParams(dimension_semantics=("parallel",)),
    )(xva, emb_prev, tgt, mask, params['vqg_wva'], params['vqg_w3'],
      params['vqg_b'], params['vqg_wout'], params['vqg_bout'])
    return q_logits, loss.reshape(B)


# ------------------------- parameters ---------------------------------------
def init_params(key):
    keys = jax.random.split(key, 12)

    def dense(k, shape, fan_in):
        return jax.random.normal(k, shape, jnp.float32) / jnp.sqrt(float(fan_in))

    # list_linear_v_fusion packed as a block-diagonal (G*DIM_V, GH) weight
    wf = dense(keys[5], (NB_GLIMPSES, DIM_V, DIM_H), DIM_V)
    wf_block = jnp.zeros((NB_GLIMPSES * DIM_V, GH), jnp.float32)
    for g in range(NB_GLIMPSES):
        wf_block = wf_block.at[g * DIM_V:(g + 1) * DIM_V,
                               g * DIM_H:(g + 1) * DIM_H].set(wf[g])

    # classifier weight (answer-embedding tied); transpose once at init
    wc = dense(keys[7], (VOCAB_ANSWERS, GH), GH)

    # vqg decoder: stack the two visual/answer input weights into one matrix
    vqg_w1 = dense(keys[8], (GH, DIM_DEC), GH)
    vqg_w2 = dense(keys[9], (GH, DIM_DEC), GH)
    vqg_wva = jnp.concatenate([vqg_w1, vqg_w2], axis=0)   # (2*GH, DIM_DEC)

    return {
        # shared_conv_layer (None in __init__; synthetic 1x1 conv here)
        'conv_w': dense(keys[0], (C_IN, DIM_V), C_IN),
        'conv_b': jnp.zeros((1, DIM_V), jnp.float32),
        # seq2vec / word embedding
        'word_emb': dense(keys[1], (VOCAB_WORDS, DIM_Q), DIM_Q),
        # attention
        'att_wv': dense(keys[2], (DIM_V, DIM_ATT), DIM_V),
        'att_wq': dense(keys[3], (DIM_Q, DIM_ATT), DIM_Q),
        'att_w':  dense(keys[4], (DIM_ATT, NB_GLIMPSES), DIM_ATT),
        # glimpse fusion (block-diagonal packed)
        'wf_block': wf_block,
        'bf': jnp.zeros((1, GH), jnp.float32),
        # vqa fusion of question
        'wqf': dense(keys[6], (DIM_Q, GH), DIM_Q),
        'bqf': jnp.zeros((1, GH), jnp.float32),
        # linear_classif.weight (num_classes, GH), tied to answer_embeddings
        'wc': wc,
        'wc_t': wc.T,
        'bc': jnp.zeros((1, VOCAB_ANSWERS), jnp.float32),
        # vqg decoder
        'vqg_wva': vqg_wva,
        'vqg_w3': dense(keys[10], (DIM_Q, DIM_DEC), DIM_Q),
        'vqg_b': jnp.zeros((1, DIM_DEC), jnp.float32),
        'vqg_wout': dense(keys[11], (DIM_DEC, VOCAB_WORDS), DIM_DEC),
        'vqg_bout': jnp.zeros((1, VOCAB_WORDS), jnp.float32),
    }


# ------------------------- forward (training branch of reference) -----------
@jax.jit
def dual_model_forward(params, input_v, input_q, target_a, sample_key):
    Bv, Cv, Hv, Wv = input_v.shape
    # NCHW -> channels-last, spatial flattened per batch
    x_cl = jnp.transpose(input_v, (0, 2, 3, 1)).reshape(Bv, Hv * Wv, Cv)

    # seq2vec: embedding lookup + mean-pool (gather is glue, not a kernel)
    emb_q = jnp.take(params['word_emb'], input_q, axis=0)       # (B, T, DIM_Q)
    x_q_vec = jnp.mean(emb_q, axis=1).reshape(Bv, 1, DIM_Q)

    # kernel 1: shared conv -> attention -> glimpse fusion -> answer logits
    att_v_fused, answers = vqa_forward(x_cl, x_q_vec, params)   # (B,GH), (B,A)

    # F.softmax(answers).multinomial() -> categorical sample over the logits
    selected_answer = jax.random.categorical(sample_key, answers, axis=-1)

    # answer embedding, weight tied to linear_classif.weight
    x_a_vec = jnp.take(params['wc'], target_a, axis=0)          # (B, GH)

    # TODO(synk): external vqg_modules.* (RNN / VQA_Dual) unavailable; a
    # teacher-forced one-layer MLP decoder over input_q[:, :-1] stands in.
    xva = jnp.concatenate([att_v_fused, x_a_vec], axis=1).reshape(Bv, 1, 2 * GH)
    emb_prev = jnp.take(params['word_emb'], input_q[:, :-1], axis=0)  # (B,T-1,DIM_Q)
    tgt = input_q[:, 1:].reshape(Bv, TM1, 1).astype(jnp.int32)

    # process_lengths + per-sample mask over valid positions
    lengths = jnp.clip(jnp.sum((input_q != 0).astype(jnp.int32), axis=1) - 1, 1, TM1)
    mask = (jnp.arange(TM1)[None, :] < lengths[:, None]).astype(jnp.float32)
    mask = mask.reshape(Bv, TM1, 1)

    # kernel 2: decoder logits + per-sample masked cross entropy
    questions, loss_q = vqg_and_loss(xva, emb_prev, tgt, mask, params)

    # TODO(synk): torch .reinforce() on the stochastic sample has no JAX equivalent.
    return answers, selected_answer, questions, loss_q


# ------------------------- main ---------------------------------------------
if __name__ == "__main__":
    key = jax.random.PRNGKey(0)
    pkey, vkey, qkey, akey, skey = jax.random.split(key, 5)
    params = init_params(pkey)

    input_v = jax.random.normal(vkey, (B, C_IN, H, W), jnp.float32)
    input_q = jax.random.randint(qkey, (B, T), 1, VOCAB_WORDS, dtype=jnp.int32)
    target_a = jax.random.randint(akey, (B,), 0, VOCAB_ANSWERS, dtype=jnp.int32)

    outs = dual_model_forward(params, input_v, input_q, target_a, skey)
    outs = jax.block_until_ready(outs)
    answers, selected_answer, questions, loss_q = outs

    assert answers.shape == (B, VOCAB_ANSWERS)
    assert selected_answer.shape == (B,)
    assert questions.shape == (B, T - 1, VOCAB_WORDS)
    assert loss_q.shape == (B,)
    assert bool(jnp.all(jnp.isfinite(answers)))
    assert bool(jnp.all(jnp.isfinite(questions)))
    assert bool(jnp.all(jnp.isfinite(loss_q)))
    print("KERNEL_OK")
</pallas_src>

<mosaic_0001>
module attributes {stable_mosaic.version = 11 : i64} {
  func.func @_vqa_kernel(%arg0: i32, %arg1: memref<1x64x4xf32, #tpu.memory_space<vmem>>, %arg2: memref<1x1x32xf32, #tpu.memory_space<vmem>>, %arg3: memref<4x32xf32, #tpu.memory_space<vmem>>, %arg4: memref<1x32xf32, #tpu.memory_space<vmem>>, %arg5: memref<32x32xf32, #tpu.memory_space<vmem>>, %arg6: memref<32x32xf32, #tpu.memory_space<vmem>>, %arg7: memref<32x2xf32, #tpu.memory_space<vmem>>, %arg8: memref<64x64xf32, #tpu.memory_space<vmem>>, %arg9: memref<1x64xf32, #tpu.memory_space<vmem>>, %arg10: memref<32x64xf32, #tpu.memory_space<vmem>>, %arg11: memref<1x64xf32, #tpu.memory_space<vmem>>, %arg12: memref<64x12xf32, #tpu.memory_space<vmem>>, %arg13: memref<1x12xf32, #tpu.memory_space<vmem>>, %arg14: memref<1x1x64xf32, #tpu.memory_space<vmem>>, %arg15: memref<1x1x12xf32, #tpu.memory_space<vmem>>) attributes {dimension_semantics = [#tpu.dimension_semantics<parallel>], iteration_bounds = array<i64: 2>, scalar_prefetch = 0 : i64, scratch_operands = 0 : i64, tpu.core_type = #tpu.core_type<tc>, window_params = [{transform_indices = @transform_0, window_bounds = array<i64: 1, 64, 4>}, {transform_indices = @transform_1, window_bounds = array<i64: 1, 1, 32>}, {pipeline_mode = #tpu.pipeline_mode<synchronous>, transform_indices = @transform_2, window_bounds = array<i64: 4, 32>}, {pipeline_mode = #tpu.pipeline_mode<synchronous>, transform_indices = @transform_3, window_bounds = array<i64: 1, 32>}, {pipeline_mode = #tpu.pipeline_mode<synchronous>, transform_indices = @transform_4, window_bounds = array<i64: 32, 32>}, {pipeline_mode = #tpu.pipeline_mode<synchronous>, transform_indices = @transform_5, window_bounds = array<i64: 32, 32>}, {pipeline_mode = #tpu.pipeline_mode<synchronous>, transform_indices = @transform_6, window_bounds = array<i64: 32, 2>}, {pipeline_mode = #tpu.pipeline_mode<synchronous>, transform_indices = @transform_7, window_bounds = array<i64: 64, 64>}, {pipeline_mode = #tpu.pipeline_mode<synchronous>, transform_indices = @transform_8, window_bounds = array<i64: 1, 64>}, {pipeline_mode = #tpu.pipeline_mode<synchronous>, transform_indices = @transform_9, window_bounds = array<i64: 32, 64>}, {pipeline_mode = #tpu.pipeline_mode<synchronous>, transform_indices = @transform_10, window_bounds = array<i64: 1, 64>}, {pipeline_mode = #tpu.pipeline_mode<synchronous>, transform_indices = @transform_11, window_bounds = array<i64: 64, 12>}, {pipeline_mode = #tpu.pipeline_mode<synchronous>, transform_indices = @transform_12, window_bounds = array<i64: 1, 12>}, {transform_indices = @transform_13, window_bounds = array<i64: 1, 1, 64>}, {transform_indices = @transform_14, window_bounds = array<i64: 1, 1, 12>}]} {
    %c0 = arith.constant 0 : index
    %c0_0 = arith.constant 0 : index
    %c0_1 = arith.constant 0 : index
    %0 = vector.load %arg1[%c0, %c0_0, %c0_1] : memref<1x64x4xf32, #tpu.memory_space<vmem>>, vector<1x64x4xf32>
    %1 = vector.shape_cast %0 : vector<1x64x4xf32> to vector<64x4xf32>
    %c0_2 = arith.constant 0 : index
    %c0_3 = arith.constant 0 : index
    %c0_4 = arith.constant 0 : index
    %2 = vector.load %arg2[%c0_2, %c0_3, %c0_4] : memref<1x1x32xf32, #tpu.memory_space<vmem>>, vector<1x1x32xf32>
    %3 = vector.shape_cast %2 : vector<1x1x32xf32> to vector<1x32xf32>
    %c0_5 = arith.constant 0 : index
    %c0_6 = arith.constant 0 : index
    %4 = vector.load %arg3[%c0_5, %c0_6] : memref<4x32xf32, #tpu.memory_space<vmem>>, vector<4x32xf32>
    %cst = arith.constant dense<0.000000e+00> : vector<64x32xf32>
    %5 = tpu.matmul %1, %4, %cst {dimension_numbers = #tpu.dot_dimension_numbers<[1], [0], [0], [1], [0, 0, 1, 1], [], []>} : vector<64x4xf32>, vector<4x32xf32>, vector<64x32xf32> -> vector<64x32xf32>
    %c0_7 = arith.constant 0 : index
    %c0_8 = arith.constant 0 : index
    %6 = vector.load %arg4[%c0_7, %c0_8] : memref<1x32xf32, #tpu.memory_space<vmem>>, vector<1x32xf32>
    %7 = vector.broadcast %6 : vector<1x32xf32> to vector<64x32xf32>
    %8 = arith.addf %5, %7 : vector<64x32xf32>
    %c0_9 = arith.constant 0 : index
    %c0_10 = arith.constant 0 : index
    %9 = vector.load %arg5[%c0_9, %c0_10] : memref<32x32xf32, #tpu.memory_space<vmem>>, vector<32x32xf32>
    %cst_11 = arith.constant dense<0.000000e+00> : vector<64x32xf32>
    %10 = tpu.matmul %8, %9, %cst_11 {dimension_numbers = #tpu.dot_dimension_numbers<[1], [0], [0], [1], [0, 0, 1, 1], [], []>} : vector<64x32xf32>, vector<32x32xf32>, vector<64x32xf32> -> vector<64x32xf32>
    %c0_12 = arith.constant 0 : index
    %c0_13 = arith.constant 0 : index
    %11 = vector.load %arg6[%c0_12, %c0_13] : memref<32x32xf32, #tpu.memory_space<vmem>>, vector<32x32xf32>
    %cst_14 = arith.constant dense<0.000000e+00> : vector<1x32xf32>
    %12 = tpu.matmul %3, %11, %cst_14 {dimension_numbers = #tpu.dot_dimension_numbers<[1], [0], [0], [1], [0, 0, 1, 1], [], []>} : vector<1x32xf32>, vector<32x32xf32>, vector<1x32xf32> -> vector<1x32xf32>
    %13 = vector.broadcast %12 : vector<1x32xf32> to vector<64x32xf32>
    %14 = arith.addf %10, %13 : vector<64x32xf32>
    %15 = math.tanh %14 : vector<64x32xf32>
    %c0_15 = arith.constant 0 : index
    %c0_16 = arith.constant 0 : index
    %16 = vector.load %arg7[%c0_15, %c0_16] : memref<32x2xf32, #tpu.memory_space<vmem>>, vector<32x2xf32>
    %cst_17 = arith.constant dense<0.000000e+00> : vector<64x2xf32>
    %17 = tpu.matmul %15, %16, %cst_17 {dimension_numbers = #tpu.dot_dimension_numbers<[1], [0], [0], [1], [0, 0, 1, 1], [], []>} : vector<64x32xf32>, vector<32x2xf32>, vector<64x2xf32> -> vector<64x2xf32>
    %cst_18 = arith.constant dense<0xFF800000> : vector<2xf32>
    %18 = vector.multi_reduction <maximumf>, %17, %cst_18 [0] : vector<64x2xf32> to vector<2xf32>
    %19 = vector.shape_cast %18 : vector<2xf32> to vector<1x2xf32>
    %20 = vector.broadcast %19 : vector<1x2xf32> to vector<64x2xf32>
    %21 = arith.subf %17, %20 : vector<64x2xf32>
    %22 = math.exp %21 : vector<64x2xf32>
    %cst_19 = arith.constant dense<0.000000e+00> : vector<2xf32>
    %23 = vector.multi_reduction <add>, %22, %cst_19 [0] : vector<64x2xf32> to vector<2xf32>
    %24 = vector.shape_cast %23 : vector<2xf32> to vector<1x2xf32>
    %25 = tpu.reciprocal %24 {approx = true} : vector<1x2xf32> -> vector<1x2xf32>
    %26 = vector.broadcast %25 : vector<1x2xf32> to vector<64x2xf32>
    %27 = arith.mulf %22, %26 : vector<64x2xf32>
    %cst_20 = arith.constant dense<0.000000e+00> : vector<2x32xf32>
    %28 = tpu.matmul %27, %8, %cst_20 {dimension_numbers = #tpu.dot_dimension_numbers<[0], [0], [1], [1], [0, 1, 1, 1], [], []>} : vector<64x2xf32>, vector<64x32xf32>, vector<2x32xf32> -> vector<2x32xf32>
    %29 = vector.extract_strided_slice %28 {offsets = [0, 0], sizes = [1, 32], strides = [1, 1]} : vector<2x32xf32> to vector<1x32xf32>
    %30 = vector.extract_strided_slice %28 {offsets = [1, 0], sizes = [1, 32], strides = [1, 1]} : vector<2x32xf32> to vector<1x32xf32>
    %31 = tpu.concatenate %29, %30 in 1 : vector<1x32xf32>, vector<1x32xf32> -> vector<1x64xf32>
    %c0_21 = arith.constant 0 : index
    %c0_22 = arith.constant 0 : index
    %32 = vector.load %arg8[%c0_21, %c0_22] : memref<64x64xf32, #tpu.memory_space<vmem>>, vector<64x64xf32>
    %cst_23 = arith.constant dense<0.000000e+00> : vector<1x64xf32>
    %33 = tpu.matmul %31, %32, %cst_23 {dimension_numbers = #tpu.dot_dimension_numbers<[1], [0], [0], [1], [0, 0, 1, 1], [], []>} : vector<1x64xf32>, vector<64x64xf32>, vector<1x64xf32> -> vector<1x64xf32>
    %c0_24 = arith.constant 0 : index
    %c0_25 = arith.constant 0 : index
    %34 = vector.load %arg9[%c0_24, %c0_25] : memref<1x64xf32, #tpu.memory_space<vmem>>, vector<1x64xf32>
    %35 = arith.addf %33, %34 : vector<1x64xf32>
    %36 = math.tanh %35 : vector<1x64xf32>
    %c0_26 = arith.constant 0 : index
    %c0_27 = arith.constant 0 : index
    %c0_28 = arith.constant 0 : index
    %37 = vector.load %arg14[%c0_26, %c0_27, %c0_28] : memref<1x1x64xf32, #tpu.memory_space<vmem>>, vector<1x1x64xf32>
    %38 = vector.shape_cast %37 : vector<1x1x64xf32> to vector<1x64xf32>
    %39 = vector.shape_cast %36 : vector<1x64xf32> to vector<1x1x64xf32>
    tpu.vector_store %arg14[%c0_26, %c0_27, %c0_28], %39 {strides = array<i32>} : memref<1x1x64xf32, #tpu.memory_space<vmem>>, vector<1x1x64xf32>,
    %c0_29 = arith.constant 0 : index
    %c0_30 = arith.constant 0 : index
    %40 = vector.load %arg10[%c0_29, %c0_30] : memref<32x64xf32, #tpu.memory_space<vmem>>, vector<32x64xf32>
    %cst_31 = arith.constant dense<0.000000e+00> : vector<1x64xf32>
    %41 = tpu.matmul %3, %40, %cst_31 {dimension_numbers = #tpu.dot_dimension_numbers<[1], [0], [0], [1], [0, 0, 1, 1], [], []>} : vector<1x32xf32>, vector<32x64xf32>, vector<1x64xf32> -> vector<1x64xf32>
    %c0_32 = arith.constant 0 : index
    %c0_33 = arith.constant 0 : index
    %42 = vector.load %arg11[%c0_32, %c0_33] : memref<1x64xf32, #tpu.memory_space<vmem>>, vector<1x64xf32>
    %43 = arith.addf %41, %42 : vector<1x64xf32>
    %44 = math.tanh %43 : vector<1x64xf32>
    %45 = arith.mulf %36, %44 : vector<1x64xf32>
    %c0_34 = arith.constant 0 : index
    %c0_35 = arith.constant 0 : index
    %46 = vector.load %arg12[%c0_34, %c0_35] : memref<64x12xf32, #tpu.memory_space<vmem>>, vector<64x12xf32>
    %cst_36 = arith.constant dense<0.000000e+00> : vector<1x12xf32>
    %47 = tpu.matmul %45, %46, %cst_36 {dimension_numbers = #tpu.dot_dimension_numbers<[1], [0], [0], [1], [0, 0, 1, 1], [], []>} : vector<1x64xf32>, vector<64x12xf32>, vector<1x12xf32> -> vector<1x12xf32>
    %c0_37 = arith.constant 0 : index
    %c0_38 = arith.constant 0 : index
    %48 = vector.load %arg13[%c0_37, %c0_38] : memref<1x12xf32, #tpu.memory_space<vmem>>, vector<1x12xf32>
    %49 = arith.addf %47, %48 : vector<1x12xf32>
    %c0_39 = arith.constant 0 : index
    %c0_40 = arith.constant 0 : index
    %c0_41 = arith.constant 0 : index
    %50 = vector.load %arg15[%c0_39, %c0_40, %c0_41] : memref<1x1x12xf32, #tpu.memory_space<vmem>>, vector<1x1x12xf32>
    %51 = vector.shape_cast %50 : vector<1x1x12xf32> to vector<1x12xf32>
    %52 = vector.shape_cast %49 : vector<1x12xf32> to vector<1x1x12xf32>
    tpu.vector_store %arg15[%c0_39, %c0_40, %c0_41], %52 {strides = array<i32>} : memref<1x1x12xf32, #tpu.memory_space<vmem>>, vector<1x1x12xf32>,
    return
  }
  func.func @transform_0(%arg0: i32) -> (i32, i32, i32) {
    %c0_i32 = arith.constant 0 : i32
    %c0_i32_0 = arith.constant 0 : i32
    %c0_i32_1 = arith.constant 0 : i32
    return %arg0, %c0_i32, %c0_i32_0 : i32, i32, i32
  }
  func.func @transform_1(%arg0: i32) -> (i32, i32, i32) {
    %c0_i32 = arith.constant 0 : i32
    %c0_i32_0 = arith.constant 0 : i32
    %c0_i32_1 = arith.constant 0 : i32
    return %arg0, %c0_i32, %c0_i32_0 : i32, i32, i32
  }
  func.func @transform_2(%arg0: i32) -> (i32, i32) {
    %c0_i32 = arith.constant 0 : i32
    %c0_i32_0 = arith.constant 0 : i32
    %c0_i32_1 = arith.constant 0 : i32
    return %c0_i32, %c0_i32_0 : i32, i32
  }
  func.func @transform_3(%arg0: i32) -> (i32, i32) {
    %c0_i32 = arith.constant 0 : i32
    %c0_i32_0 = arith.constant 0 : i32
    %c0_i32_1 = arith.constant 0 : i32
    return %c0_i32, %c0_i32_0 : i32, i32
  }
  func.func @transform_4(%arg0: i32) -> (i32, i32) {
    %c0_i32 = arith.constant 0 : i32
    %c0_i32_0 = arith.constant 0 : i32
    %c0_i32_1 = arith.constant 0 : i32
    return %c0_i32, %c0_i32_0 : i32, i32
  }
  func.func @transform_5(%arg0: i32) -> (i32, i32) {
    %c0_i32 = arith.constant 0 : i32
    %c0_i32_0 = arith.constant 0 : i32
    %c0_i32_1 = arith.constant 0 : i32
    return %c0_i32, %c0_i32_0 : i32, i32
  }
  func.func @transform_6(%arg0: i32) -> (i32, i32) {
    %c0_i32 = arith.constant 0 : i32
    %c0_i32_0 = arith.constant 0 : i32
    %c0_i32_1 = arith.constant 0 : i32
    return %c0_i32, %c0_i32_0 : i32, i32
  }
  func.func @transform_7(%arg0: i32) -> (i32, i32) {
    %c0_i32 = arith.constant 0 : i32
    %c0_i32_0 = arith.constant 0 : i32
    %c0_i32_1 = arith.constant 0 : i32
    return %c0_i32, %c0_i32_0 : i32, i32
  }
  func.func @transform_8(%arg0: i32) -> (i32, i32) {
    %c0_i32 = arith.constant 0 : i32
    %c0_i32_0 = arith.constant 0 : i32
    %c0_i32_1 = arith.constant 0 : i32
    return %c0_i32, %c0_i32_0 : i32, i32
  }
  func.func @transform_9(%arg0: i32) -> (i32, i32) {
    %c0_i32 = arith.constant 0 : i32
    %c0_i32_0 = arith.constant 0 : i32
    %c0_i32_1 = arith.constant 0 : i32
    return %c0_i32, %c0_i32_0 : i32, i32
  }
  func.func @transform_10(%arg0: i32) -> (i32, i32) {
    %c0_i32 = arith.constant 0 : i32
    %c0_i32_0 = arith.constant 0 : i32
    %c0_i32_1 = arith.constant 0 : i32
    return %c0_i32, %c0_i32_0 : i32, i32
  }
  func.func @transform_11(%arg0: i32) -> (i32, i32) {
    %c0_i32 = arith.constant 0 : i32
    %c0_i32_0 = arith.constant 0 : i32
    %c0_i32_1 = arith.constant 0 : i32
    return %c0_i32, %c0_i32_0 : i32, i32
  }
  func.func @transform_12(%arg0: i32) -> (i32, i32) {
    %c0_i32 = arith.constant 0 : i32
    %c0_i32_0 = arith.constant 0 : i32
    %c0_i32_1 = arith.constant 0 : i32
    return %c0_i32, %c0_i32_0 : i32, i32
  }
  func.func @transform_13(%arg0: i32) -> (i32, i32, i32) {
    %c0_i32 = arith.constant 0 : i32
    %c0_i32_0 = arith.constant 0 : i32
    %c0_i32_1 = arith.constant 0 : i32
    return %arg0, %c0_i32, %c0_i32_0 : i32, i32, i32
  }
  func.func @transform_14(%arg0: i32) -> (i32, i32, i32) {
    %c0_i32 = arith.constant 0 : i32
    %c0_i32_0 = arith.constant 0 : i32
    %c0_i32_1 = arith.constant 0 : i32
    return %arg0, %c0_i32, %c0_i32_0 : i32, i32, i32
  }
}

module attributes {stable_mosaic.version = 11 : i64} {
  func.func @_vqg_loss_kernel(%arg0: i32, %arg1: memref<1x1x128xf32, #tpu.memory_space<vmem>>, %arg2: memref<1x7x32xf32, #tpu.memory_space<vmem>>, %arg3: memref<1x7x1xi32, #tpu.memory_space<vmem>>, %arg4: memref<1x7x1xf32, #tpu.memory_space<vmem>>, %arg5: memref<128x32xf32, #tpu.memory_space<vmem>>, %arg6: memref<32x32xf32, #tpu.memory_space<vmem>>, %arg7: memref<1x32xf32, #tpu.memory_space<vmem>>, %arg8: memref<32x128xf32, #tpu.memory_space<vmem>>, %arg9: memref<1x128xf32, #tpu.memory_space<vmem>>, %arg10: memref<1x7x128xf32, #tpu.memory_space<vmem>>, %arg11: memref<1x1x1xf32, #tpu.memory_space<vmem>>) attributes {dimension_semantics = [#tpu.dimension_semantics<parallel>], iteration_bounds = array<i64: 2>, scalar_prefetch = 0 : i64, scratch_operands = 0 : i64, tpu.core_type = #tpu.core_type<tc>, window_params = [{transform_indices = @transform_0, window_bounds = array<i64: 1, 1, 128>}, {transform_indices = @transform_1, window_bounds = array<i64: 1, 7, 32>}, {transform_indices = @transform_2, window_bounds = array<i64: 1, 7, 1>}, {transform_indices = @transform_3, window_bounds = array<i64: 1, 7, 1>}, {pipeline_mode = #tpu.pipeline_mode<synchronous>, transform_indices = @transform_4, window_bounds = array<i64: 128, 32>}, {pipeline_mode = #tpu.pipeline_mode<synchronous>, transform_indices = @transform_5, window_bounds = array<i64: 32, 32>}, {pipeline_mode = #tpu.pipeline_mode<synchronous>, transform_indices = @transform_6, window_bounds = array<i64: 1, 32>}, {pipeline_mode = #tpu.pipeline_mode<synchronous>, transform_indices = @transform_7, window_bounds = array<i64: 32, 128>}, {pipeline_mode = #tpu.pipeline_mode<synchronous>, transform_indices = @transform_8, window_bounds = array<i64: 1, 128>}, {transform_indices = @transform_9, window_bounds = array<i64: 1, 7, 128>}, {transform_indices = @transform_10, window_bounds = array<i64: 1, 1, 1>}]} {
    %c0 = arith.constant 0 : index
    %c0_0 = arith.constant 0 : index
    %c0_1 = arith.constant 0 : index
    %0 = vector.load %arg1[%c0, %c0_0, %c0_1] : memref<1x1x128xf32, #tpu.memory_space<vmem>>, vector<1x1x128xf32>
    %1 = vector.shape_cast %0 : vector<1x1x128xf32> to vector<1x128xf32>
    %c0_2 = arith.constant 0 : index
    %c0_3 = arith.constant 0 : index
    %c0_4 = arith.constant 0 : index
    %2 = vector.load %arg2[%c0_2, %c0_3, %c0_4] : memref<1x7x32xf32, #tpu.memory_space<vmem>>, vector<1x7x32xf32>
    %3 = vector.shape_cast %2 : vector<1x7x32xf32> to vector<7x32xf32>
    %c0_5 = arith.constant 0 : index
    %c0_6 = arith.constant 0 : index
    %4 = vector.load %arg5[%c0_5, %c0_6] : memref<128x32xf32, #tpu.memory_space<vmem>>, vector<128x32xf32>
    %cst = arith.constant dense<0.000000e+00> : vector<1x32xf32>
    %5 = tpu.matmul %1, %4, %cst {dimension_numbers = #tpu.dot_dimension_numbers<[1], [0], [0], [1], [0, 0, 1, 1], [], []>} : vector<1x128xf32>, vector<128x32xf32>, vector<1x32xf32> -> vector<1x32xf32>
    %c0_7 = arith.constant 0 : index
    %c0_8 = arith.constant 0 : index
    %6 = vector.load %arg7[%c0_7, %c0_8] : memref<1x32xf32, #tpu.memory_space<vmem>>, vector<1x32xf32>
    %7 = arith.addf %5, %6 : vector<1x32xf32>
    %c0_9 = arith.constant 0 : index
    %c0_10 = arith.constant 0 : index
    %8 = vector.load %arg6[%c0_9, %c0_10] : memref<32x32xf32, #tpu.memory_space<vmem>>, vector<32x32xf32>
    %cst_11 = arith.constant dense<0.000000e+00> : vector<7x32xf32>
    %9 = tpu.matmul %3, %8, %cst_11 {dimension_numbers = #tpu.dot_dimension_numbers<[1], [0], [0], [1], [0, 0, 1, 1], [], []>} : vector<7x32xf32>, vector<32x32xf32>, vector<7x32xf32> -> vector<7x32xf32>
    %10 = vector.broadcast %7 : vector<1x32xf32> to vector<7x32xf32>
    %11 = arith.addf %9, %10 : vector<7x32xf32>
    %12 = math.tanh %11 : vector<7x32xf32>
    %c0_12 = arith.constant 0 : index
    %c0_13 = arith.constant 0 : index
    %13 = vector.load %arg8[%c0_12, %c0_13] : memref<32x128xf32, #tpu.memory_space<vmem>>, vector<32x128xf32>
    %cst_14 = arith.constant dense<0.000000e+00> : vector<7x128xf32>
    %14 = tpu.matmul %12, %13, %cst_14 {dimension_numbers = #tpu.dot_dimension_numbers<[1], [0], [0], [1], [0, 0, 1, 1], [], []>} : vector<7x32xf32>, vector<32x128xf32>, vector<7x128xf32> -> vector<7x128xf32>
    %c0_15 = arith.constant 0 : index
    %c0_16 = arith.constant 0 : index
    %15 = vector.load %arg9[%c0_15, %c0_16] : memref<1x128xf32, #tpu.memory_space<vmem>>, vector<1x128xf32>
    %16 = vector.broadcast %15 : vector<1x128xf32> to vector<7x128xf32>
    %17 = arith.addf %14, %16 : vector<7x128xf32>
    %c0_17 = arith.constant 0 : index
    %c0_18 = arith.constant 0 : index
    %c0_19 = arith.constant 0 : index
    %18 = vector.load %arg10[%c0_17, %c0_18, %c0_19] : memref<1x7x128xf32, #tpu.memory_space<vmem>>, vector<1x7x128xf32>
    %19 = vector.shape_cast %18 : vector<1x7x128xf32> to vector<7x128xf32>
    %20 = vector.shape_cast %17 : vector<7x128xf32> to vector<1x7x128xf32>
    tpu.vector_store %arg10[%c0_17, %c0_18, %c0_19], %20 {strides = array<i32>} : memref<1x7x128xf32, #tpu.memory_space<vmem>>, vector<1x7x128xf32>,
    %cst_20 = arith.constant dense<0xFF800000> : vector<7xf32>
    %21 = vector.multi_reduction <maximumf>, %17, %cst_20 [1] : vector<7x128xf32> to vector<7xf32>
    %22 = vector.shape_cast %21 : vector<7xf32> to vector<7x1xf32>
    %23 = vector.broadcast %22 : vector<7x1xf32> to vector<7x128xf32>
    %24 = arith.subf %17, %23 : vector<7x128xf32>
    %25 = math.exp %24 : vector<7x128xf32>
    %cst_21 = arith.constant dense<0.000000e+00> : vector<7xf32>
    %26 = vector.multi_reduction <add>, %25, %cst_21 [1] : vector<7x128xf32> to vector<7xf32>
    %27 = vector.shape_cast %26 : vector<7xf32> to vector<7x1xf32>
    %28 = math.log %27 : vector<7x1xf32>
    %29 = arith.addf %28, %22 : vector<7x1xf32>
    %c0_22 = arith.constant 0 : index
    %c0_23 = arith.constant 0 : index
    %c0_24 = arith.constant 0 : index
    %30 = vector.load %arg3[%c0_22, %c0_23, %c0_24] : memref<1x7x1xi32, #tpu.memory_space<vmem>>, vector<1x7x1xi32>
    %31 = vector.shape_cast %30 : vector<1x7x1xi32> to vector<7x1xi32>
    %32 = tpu.iota {dimensions = array<i32: 1>} : vector<7x128xi32>
    %33 = vector.broadcast %31 : vector<7x1xi32> to vector<7x128xi32>
    %34 = arith.cmpi eq, %32, %33 : vector<7x128xi32>
    %35 = arith.extui %34 : vector<7x128xi1> to vector<7x128xi32>
    %36 = arith.sitofp %35 : vector<7x128xi32> to vector<7x128xf32>
    %37 = arith.mulf %17, %36 : vector<7x128xf32>
    %cst_25 = arith.constant dense<0.000000e+00> : vector<7xf32>
    %38 = vector.multi_reduction <add>, %37, %cst_25 [1] : vector<7x128xf32> to vector<7xf32>
    %39 = vector.shape_cast %38 : vector<7xf32> to vector<7x1xf32>
    %40 = arith.subf %29, %39 : vector<7x1xf32>
    %c0_26 = arith.constant 0 : index
    %c0_27 = arith.constant 0 : index
    %c0_28 = arith.constant 0 : index
    %41 = vector.load %arg4[%c0_26, %c0_27, %c0_28] : memref<1x7x1xf32, #tpu.memory_space<vmem>>, vector<1x7x1xf32>
    %42 = vector.shape_cast %41 : vector<1x7x1xf32> to vector<7x1xf32>
    %43 = arith.mulf %40, %42 : vector<7x1xf32>
    %cst_29 = arith.constant dense<0.000000e+00> : vector<1xf32>
    %44 = vector.multi_reduction <add>, %43, %cst_29 [0] : vector<7x1xf32> to vector<1xf32>
    %45 = vector.shape_cast %44 : vector<1xf32> to vector<1x1xf32>
    %cst_30 = arith.constant dense<0.000000e+00> : vector<1xf32>
    %46 = vector.multi_reduction <add>, %42, %cst_30 [0] : vector<7x1xf32> to vector<1xf32>
    %47 = vector.shape_cast %46 : vector<1xf32> to vector<1x1xf32>
    %cst_31 = arith.constant 1.000000e+00 : f32
    %48 = vector.broadcast %cst_31 : f32 to vector<1x1xf32>
    %49 = arith.maximumf %47, %48 : vector<1x1xf32>
    %50 = arith.divf %45, %49 : vector<1x1xf32>
    %c0_32 = arith.constant 0 : index
    %c0_33 = arith.constant 0 : index
    %c0_34 = arith.constant 0 : index
    %51 = vector.load %arg11[%c0_32, %c0_33, %c0_34] : memref<1x1x1xf32, #tpu.memory_space<vmem>>, vector<1x1x1xf32>
    %52 = vector.shape_cast %51 : vector<1x1x1xf32> to vector<1x1xf32>
    %53 = vector.shape_cast %50 : vector<1x1xf32> to vector<1x1x1xf32>
    tpu.vector_store %arg11[%c0_32, %c0_33, %c0_34], %53 {strides = array<i32>} : memref<1x1x1xf32, #tpu.memory_space<vmem>>, vector<1x1x1xf32>,
    return
  }
  func.func @transform_0(%arg0: i32) -> (i32, i32, i32) {
    %c0_i32 = arith.constant 0 : i32
    %c0_i32_0 = arith.constant 0 : i32
    %c0_i32_1 = arith.constant 0 : i32
    return %arg0, %c0_i32, %c0_i32_0 : i32, i32, i32
  }
  func.func @transform_1(%arg0: i32) -> (i32, i32, i32) {
    %c0_i32 = arith.constant 0 : i32
    %c0_i32_0 = arith.constant 0 : i32
    %c0_i32_1 = arith.constant 0 : i32
    return %arg0, %c0_i32, %c0_i32_0 : i32, i32, i32
  }
  func.func @transform_2(%arg0: i32) -> (i32, i32, i32) {
    %c0_i32 = arith.constant 0 : i32
    %c0_i32_0 = arith.constant 0 : i32
    %c0_i32_1 = arith.constant 0 : i32
    return %arg0, %c0_i32, %c0_i32_0 : i32, i32, i32
  }
  func.func @transform_3(%arg0: i32) -> (i32, i32, i32) {
    %c0_i32 = arith.constant 0 : i32
    %c0_i32_0 = arith.constant 0 : i32
    %c0_i32_1 = arith.constant 0 : i32
    return %arg0, %c0_i32, %c0_i32_0 : i32, i32, i32
  }
  func.func @transform_4(%arg0: i32) -> (i32, i32) {
    %c0_i32 = arith.constant 0 : i32
    %c0_i32_0 = arith.constant 0 : i32
    %c0_i32_1 = arith.constant 0 : i32
    return %c0_i32, %c0_i32_0 : i32, i32
  }
  func.func @transform_5(%arg0: i32) -> (i32, i32) {
    %c0_i32 = arith.constant 0 : i32
    %c0_i32_0 = arith.constant 0 : i32
    %c0_i32_1 = arith.constant 0 : i32
    return %c0_i32, %c0_i32_0 : i32, i32
  }
  func.func @transform_6(%arg0: i32) -> (i32, i32) {
    %c0_i32 = arith.constant 0 : i32
    %c0_i32_0 = arith.constant 0 : i32
    %c0_i32_1 = arith.constant 0 : i32
    return %c0_i32, %c0_i32_0 : i32, i32
  }
  func.func @transform_7(%arg0: i32) -> (i32, i32) {
    %c0_i32 = arith.constant 0 : i32
    %c0_i32_0 = arith.constant 0 : i32
    %c0_i32_1 = arith.constant 0 : i32
    return %c0_i32, %c0_i32_0 : i32, i32
  }
  func.func @transform_8(%arg0: i32) -> (i32, i32) {
    %c0_i32 = arith.constant 0 : i32
    %c0_i32_0 = arith.constant 0 : i32
    %c0_i32_1 = arith.constant 0 : i32
    return %c0_i32, %c0_i32_0 : i32, i32
  }
  func.func @transform_9(%arg0: i32) -> (i32, i32, i32) {
    %c0_i32 = arith.constant 0 : i32
    %c0_i32_0 = arith.constant 0 : i32
    %c0_i32_1 = arith.constant 0 : i32
    return %arg0, %c0_i32, %c0_i32_0 : i32, i32, i32
  }
  func.func @transform_10(%arg0: i32) -> (i32, i32, i32) {
    %c0_i32 = arith.constant 0 : i32
    %c0_i32_0 = arith.constant 0 : i32
    %c0_i32_1 = arith.constant 0 : i32
    return %arg0, %c0_i32, %c0_i32_0 : i32, i32, i32
  }
}

</mosaic_0001>

<bundles_post_ra>
// kernel: dual_model_forward.3
= control target key start
LH: loop header
LB: loop body
LE: loop exit
PB: predicated region body
PF: predicated region fallthrough
CT: control target
= control target key end

     0   :  { %s1052_s13 = smov 0   ;;  %s1196_s0 = inlined_call_operand.vmem [shape: f32[2,1,128], index: 0, kind: input, shape index: {}]   ;;  %s1197_s1 = inlined_call_operand.vmem [shape: f32[2,7,32], index: 1, kind: input, shape index: {}]   ;;  %s1198_s2 = inlined_call_operand.vmem [shape: s32[2,7,1], index: 2, kind: input, shape index: {}]   ;;  %s1199_s3 = inlined_call_operand.vmem [shape: f32[2,7,1], index: 3, kind: input, shape index: {}]   ;;  %s1200_s4 = inlined_call_operand.vmem [shape: f32[128,32], index: 4, kind: input, shape index: {}]   ;;  %s1201_s5 = inlined_call_operand.vmem [shape: f32[32,32], index: 5, kind: input, shape index: {}]   ;;  %s1202_s6 = inlined_call_operand.vmem [shape: f32[1,32], index: 6, kind: input, shape index: {}]   ;;  %s1203_s7 = inlined_call_operand.vmem [shape: f32[32,128], index: 7, kind: input, shape index: {}]   ;;  %s1204_s8 = inlined_call_operand.vmem [shape: f32[1,128], index: 8, kind: input, shape index: {}]   ;;  %s1205_s9 = inlined_call_operand.vmem [shape: f32[2,7,128], index: 9, kind: output, shape index: {0}]   ;;  %s1206_s10 = inlined_call_operand.vmem [shape: f32[2,1,1], index: 10, kind: output, shape index: {1}]  }
   0x1 LB: > { %s829_s14 = sadd.s32 4294967295, %s991_s13   ;;  %p833_p0 = scmp.ge.s32.totalorder %s991_s13, 1  ;;  %s991_s13 = sphi %s1052_s13, %s21_s13  }
   0x2   : > { %p340_p1 = scmp.lt.s32.totalorder %s991_s13, 3 }
   0x4   : > { %p341_p2 = pnand %p833_p0, %p340_p1 }
   0x5   : > { %v414_v0 = vld [vmem:[%s1200_s4] sm:$0xff] (!%p341_p2)  ;;  %v415_v1 = vld [vmem:[%s1200_s4 + $0x8] sm:$0xff] (!%p341_p2)  ;;  %v416_v2 = vld [vmem:[%s1200_s4 + $0x10] sm:$0xff] (!%p341_p2)  ;;  %v993_v3 = vmov (!%p341_p2), 0.0|0.0   ;;  %p390_p3 = scmp.lt.s32.totalorder (!%p341_p2), %s829_s14, 1  ;;  %vm994_vm0 = vmmov (!%p341_p2), 0   ;;  %v505_v42 = vlaneseq (!%p341_p2) }
   0x6   : > { %344 = sbr.rel (%p341_p2) target bundleno = 818 (0x332), region = 56  ;;  %928 = vmatprep.subr.bf16.mxu0 (!%p341_p2), %v993_v3  ;;  %v929_v4 = vpack.c.bf16 (!%p341_p2), %v415_v1, %v414_v0  ;;  %v417_v5 = vld [vmem:[%s1200_s4 + $0x18] sm:$0xff] (!%p341_p2)  ;;  %952 = vmatprep.subr.bf16.mxu1 (!%p341_p2), %v993_v3  ;;  %v995_v6 = vmov (!%p341_p2), 0.0   ;;  %v418_v8 = vld [vmem:[%s1200_s4 + $0x20] sm:$0xff] (!%p341_p2)  ;;  %v419_v9 = vld [vmem:[%s1200_s4 + $0x28] sm:$0xff] (!%p341_p2)  ;;  %vm509_vm1 = vcmask (!%p341_p2), 261120  }
   0x7   : > { %903 = vmatprep.mubr.msk.f32.mxu0 (!%p341_p2), %vm994_vm0, %v995_v6  ;;  %914 = vmatprep.mubr.msk.f32.mxu1 (!%p341_p2), %vm994_vm0, %v995_v6  ;;  %v932_v7 = vpack.c.bf16 (!%p341_p2), %v417_v5, %v416_v2  ;;  %v501_v10 = vld [vmem:[%s1201_s5] sm:$0xff] (!%p341_p2)  ;;  %v502_v11 = vld [vmem:[%s1201_s5 + $0x8] sm:$0xff] (!%p341_p2)  ;;  %v503_v13 = vld [vmem:[%s1201_s5 + $0x10] sm:$0xff] (!%p341_p2)  ;;  %v935_v15 = vpack.c.bf16 (!%p341_p2), %v419_v9, %v418_v8  ;;  %v506_v43 = vshrl.u32 (!%p341_p2), %v505_v42, 7  ;;  %v996_v52 = vmov (!%p341_p2), 0  }
   0x8   : > { %930 = vmatpush3.bf16.msra.mxu0 (!%p341_p2), %v929_v4  ;;  %v953_v12 = vpack.c.bf16 (!%p341_p2), %v502_v11, %v501_v10  ;;  %v504_v14 = vld [vmem:[%s1201_s5 + $0x18] sm:$0xff] (!%p341_p2)  ;;  %v420_v16 = vld [vmem:[%s1200_s4 + $0x30] sm:$0xff] (!%p341_p2)  ;;  %v422_v20 = vld [vmem:[%s1200_s4 + $0x40] sm:$0xff] (!%p341_p2)  ;;  %976 = vset.pattern.permute.xlu0 (!%p341_p2), %v996_v52  ;;  %vm669_vm2 = vcmask (!%p341_p2), 1046528   ;;  %v684_v62 = vand.u32 (!%p341_p2), 127, %v505_v42  ;;  %vm698_vm4 = vcmask (!%p341_p2), 6144  }
   0x9   : > { %931 = vmatprep.subr.bf16.mxu0 (!%p341_p2), %v993_v3  ;;  %v421_v17 = vld [vmem:[%s1200_s4 + $0x38] sm:$0xff] (!%p341_p2)  ;;  %v956_v18 = vpack.c.bf16 (!%p341_p2), %v504_v14, %v503_v13  ;;  %v423_v21 = vld [vmem:[%s1200_s4 + $0x48] sm:$0xff] (!%p341_p2)  ;;  %v424_v24 = vld [vmem:[%s1200_s4 + $0x50] sm:$0xff] (!%p341_p2)  ;;  %v507_v45 = vsub.s32 (!%p341_p2), 0, %v506_v43  ;;  %vm716_vm5 = vcmask (!%p341_p2), 0  }
   0xa   : > { %954 = vmatpush3.bf16.msra.mxu1 (!%p341_p2), %v953_v12  ;;  %v938_v19 = vpack.c.bf16 (!%p341_p2), %v421_v17, %v420_v16  ;;  %v941_v23 = vpack.c.bf16 (!%p341_p2), %v423_v21, %v422_v20  ;;  %v425_v25 = vld [vmem:[%s1200_s4 + $0x58] sm:$0xff] (!%p341_p2)  ;;  %v426_v27 = vld [vmem:[%s1200_s4 + $0x60] sm:$0xff] (!%p341_p2)  ;;  %v427_v28 = vld [vmem:[%s1200_s4 + $0x68] sm:$0xff] (!%p341_p2) }
   0xb   : > { %955 = vmatprep.subr.bf16.mxu1 (!%p341_p2), %v993_v3  ;;  %v944_v26 = vpack.c.bf16 (!%p341_p2), %v425_v25, %v424_v24  ;;  %v947_v29 = vpack.c.bf16 (!%p341_p2), %v427_v28, %v426_v27  ;;  %v428_v30 = vld [vmem:[%s1200_s4 + $0x70] sm:$0xff] (!%p341_p2)  ;;  %v429_v31 = vld [vmem:[%s1200_s4 + $0x78] sm:$0xff] (!%p341_p2)  ;;  %v584_v34 = vld [vmem:[%s1203_s7] sm:$0xff] (!%p341_p2) }
   0xc   : > { %933 = vmatpush3.bf16.msra.mxu0 (!%p341_p2), %v932_v7  ;;  %v950_v32 = vpack.c.bf16 (!%p341_p2), %v429_v31, %v428_v30  ;;  %v585_v35 = vld [vmem:[%s1203_s7 + $0x8] sm:$0xff] (!%p341_p2)  ;;  %v586_v36 = vld [vmem:[%s1203_s7 + $0x10] sm:$0xff] (!%p341_p2)  ;;  %v587_v38 = vld [vmem:[%s1203_s7 + $0x18] sm:$0xff] (!%p341_p2) }
   0xd   : > { %s1208_s14 = smov (!%p390_p3, %s829_s14), 1  ;;  %934 = vmatprep.subr.bf16.mxu0 %v993_v3  ;;  %v959_v37 = vpack.c.bf16 %v585_v35, %v584_v34  ;;  %v962_v39 = vpack.c.bf16 %v587_v38, %v586_v36  ;;  %v430_v44 = vld [vmem:[%s1202_s6] sm:$0x1] }
   0xe   : > { %s1100_s17 = sshll.u32 %s1208_s14, 3  ;;  %957 = vmatpush3.bf16.msra.mxu1 %v956_v18  ;;  %s392_s26 = scalar_lea.vmem %s1196_s0, %s1208_s14  ;;  %v839_v53 = vld [vmem:[%s1204_s8] ss:$0 sm:$0xff] }
   0xf   : > { %s396_s24 = scalar_lea.vmem %s1197_s1, %s1100_s17  ;;  %958 = vmatprep.subr.bf16.mxu1 %v993_v3  ;;  %v412_v33 = vld [vmem:[%s392_s26] sm:$0x1]  ;;  %s400_s27 = scalar_lea.vmem %s1198_s2, %s1100_s17 }
  0x10   : > { %936 = vmatpush3.bf16.msra.mxu0 %v935_v15  ;;  %v413_v22 = vld [vmem:[%s396_s24] sm:$0x7f]  ;;  %s408_s24 = scalar_lea.vmem %s1205_s9, %s1100_s17  ;;  %s404_s30 = scalar_lea.vmem %s1199_s3, %s1100_s17 }
  0x11   : > { %937 = vmatprep.subr.bf16.mxu0 %v993_v3  ;;  %915 = vmatmul.mubr.msk.f32.vlgmr.msra.gmra.mrb[0].mxu1 %vm509_vm1, %v413_v22  ;;  %v682_v58 = vld [vmem:[%s400_s27] sm:$0x7f]  ;;  %s411_s12 = scalar_lea.vmem %s1206_s10, %s1208_s14 }
  0x12   : > { %925 = vmatprep.mubr.msk.f32.mxu1 %vm994_vm0, %v995_v6  ;;  %960 = vmatpush3.bf16.msra.mxu1 %v959_v37  ;;  %v696_v5 = vld [vmem:[%s404_s30] sm:$0x7f] }
  0x13   : > { %961 = vmatprep.subr.bf16.mxu1 %v993_v3  ;;  %v706_v7 = vsel %vm698_vm4, %v696_v5, 0.0 }
  0x14   : > { %939 = vmatpush3.bf16.msra.mxu0 %v938_v19  ;;  %v707_v8 = vrot.slane %v706_v7, 4 }
  0x15   : > { %940 = vmatprep.subr.bf16.mxu0 %v993_v3 }
  0x16   : > { %963 = vmatpush3.bf16.msra.mxu1 %v962_v39  ;;  %v708_v9 = vadd.f32 %v707_v8, %v706_v7 }
  0x18   : > { %942 = vmatpush3.bf16.msra.mxu0 %v941_v23 }
  0x19   : > { %943 = vmatprep.subr.bf16.mxu0 %v993_v3 }
  0x1c   : > { %945 = vmatpush3.bf16.msra.mxu0 %v944_v26 }
  0x1d   : > { %946 = vmatprep.subr.bf16.mxu0 %v993_v3 }
  0x20   : > { %948 = vmatpush3.bf16.msra.mxu0 %v947_v29 }
  0x21   : > { %949 = vmatprep.subr.bf16.mxu0 %v993_v3 }
  0x24   : > { %951 = vmatpush3.bf16.msra.mxu0 %v950_v32 }
  0x27   : > { %904 = vmatmul.mubr.f32.vlgmr.msra.gmra.mrb[0].mxu0 %v412_v33 }
  0xe4   : > { %v579_v40 = vpop.f32.mrb[0].mxu1 }
  0xe5   : > { %v916_v41 = vpop.f32.mrb[1].mxu1 }
  0xfa   : > { %v497_v46 = vpop.f32.mrb[0].mxu0 }
  0xfb   : > { %v498_v47 = vadd.f32 %v497_v46, %v430_v44  ;;  %v905_v48 = vpop.f32.mrb[1].mxu0 }
  0xfd   : > { %v508_v49 = vrot.slane %v498_v47, %v507_v45 }
  0xff   : > { %v580_v50 = vadd.f32 %v579_v40, %v508_v49 }
 0x101   : > { %977 = vtanh.f32 %v580_v50 }
 0x10b   : > { %v978_v51 = vpop.eup %977 }
 0x10c   : > { %926 = vmatmul.mubr.msk.f32.vlgmr.msra.gmra.mrb[2].mxu1 %vm509_vm1, %v978_v51 }
 0x1df   : > { %v664_v54 = vpop.f32.mrb[2].mxu1 }
 0x1e0   : > { %v665_v55 = vadd.f32 %v839_v53, %v664_v54  ;;  %v927_v56 = vpop.f32.mrb[3].mxu1 }
 0x1e2   : > { %668 = vst [vmem:[%s408_s24] sm:$0x7f] %v665_v55  ;;  %v670_v57 = vsel %vm669_vm2, %v665_v55, -inf }
 0x1e3   : > { %671 = vmax.xlane.f32.xlu0 %v670_v57 }
 0x1f9   : > { %686 = vperm.xlu0 %976, %v682_v58  }
 0x270   : > { %v672_v59 = vpop.xlane.xlu0 %671 }
 0x271   : > { %v673_v60 = vsub.f32 %v665_v55, %v672_v59 }
 0x273   : > { %v674_v61 = vmul.f32 1.442695, %v673_v60 }
 0x275   : > { %979 = vpow2.f32 %v674_v61 }
 0x278   : > { %v687_v63 = vpop.permute.xlu0 %686 }
 0x279   : > { %vm688_vm3 = vcmp.eq.s32.totalorder %v684_v62, %v687_v63 }
 0x27a   : > { %v841_v0 = vsel %vm688_vm3, 1.0, %v995_v6  ;;  %v709_v6 = vrot.slane %v708_v9, 2 }
 0x27b   : > { %v691_v3 = vmul.f32 %v841_v0, %v665_v55 }
 0x27c   : > { %v710_v11 = vadd.f32 %v709_v6, %v708_v9 }
 0x27d   : > { %v692_v4 = vsel %vm669_vm2, %v691_v3, 0.0 }
 0x27e   : > { %v711_v12 = vrot.slane %v710_v11, 1 }
 0x27f   : > { %v980_v1 = vpop.eup %979 }
 0x280   : > { %v676_v2 = vsel %vm669_vm2, %v980_v1, 0.0  ;;  %v712_v15 = vadd.f32 %v711_v12, %v710_v11 }
 0x281   : > { %677 = vadd.xlane.f32.xlu1 %v676_v2 }
 0x282   : > { %v713_v18 = vmax.f32 %v712_v15, 1.0 }
 0x285   : > { %693 = vadd.xlane.f32.xlu1 %v692_v4 }
 0x30e   : > { %v678_v10 = vpop.xlane.xlu1 %677 }
 0x30f   : > { %981 = vlog2.f32 %v678_v10 }
 0x310   : > { %983 = vrcp.f32 %v713_v18 }
 0x312   : > { %v694_v17 = vpop.xlane.xlu1 %693 }
 0x319   : > { %v982_v13 = vpop.eup %981 }
 0x31a   : > { %v680_v14 = vmul.f32 0.6931472, %v982_v13  ;;  %v984_v27 = vpop.eup %983 }
 0x31c   : > { %v681_v16 = vadd.f32 %v680_v14, %v672_v59 }
 0x31e   : > { %v695_v19 = vsub.f32 %v681_v16, %v694_v17 }
 0x320   : > { %v697_v20 = vmul.f32 %v696_v5, %v695_v19 }
 0x322   : > { %v699_v21 = vsel %vm698_vm4, %v697_v20, 0.0 }
 0x323   : > { %v700_v22 = vrot.slane %v699_v21, 4 }
 0x325   : > { %v701_v23 = vadd.f32 %v700_v22, %v699_v21 }
 0x327   : > { %v702_v24 = vrot.slane %v701_v23, 2 }
 0x329   : > { %v703_v25 = vadd.f32 %v702_v24, %v701_v23 }
 0x32b   : > { %v704_v26 = vrot.slane %v703_v25, 1 }
 0x32d   : > { %v705_v28 = vadd.f32 %v704_v26, %v703_v25 }
 0x32f   : > { %v715_v29 = vmul.f32 %v984_v27, %v705_v28 }
 0x331   : > { %717 = vst.msk [vmem:[%s411_s12] sm:$0x1] %vm716_vm5, %v715_v29 }
 0x332 PF: > { %s21_s13 = sadd.s32 1, %s991_s13  }
 0x333   : > { %p18_p4 = scmp.ge.s32.totalorder %s21_s13, 4  }
 0x335   :  { %20 = sbr.rel (!%p18_p4) target bundleno = 1 (0x1), region = 107 }

// kernel: dual_model_forward.2
= control target key start
LH: loop header
LB: loop body
LE: loop exit
PB: predicated region body
PF: predicated region fallthrough
CT: control target
= control target key end

     0   :  { %s1956_s29 = smov 0   ;;  %s2172_s0 = inlined_call_operand.vmem [shape: f32[2,64,4], index: 0, kind: input, shape index: {}]   ;;  %s2173_s1 = inlined_call_operand.vmem [shape: f32[2,1,32], index: 1, kind: input, shape index: {}]   ;;  %s2174_s2 = inlined_call_operand.vmem [shape: f32[4,32], index: 2, kind: input, shape index: {}]   ;;  %s2175_s3 = inlined_call_operand.vmem [shape: f32[1,32], index: 3, kind: input, shape index: {}]   ;;  %s2176_s4 = inlined_call_operand.vmem [shape: f32[32,32], index: 4, kind: input, shape index: {}]   ;;  %s2177_s5 = inlined_call_operand.vmem [shape: f32[32,32], index: 5, kind: input, shape index: {}]   ;;  %s2178_s6 = inlined_call_operand.vmem [shape: f32[32,2], index: 6, kind: input, shape index: {}]   ;;  %s2179_s7 = inlined_call_operand.vmem [shape: f32[64,64], index: 7, kind: input, shape index: {}]   ;;  %s2180_s8 = inlined_call_operand.vmem [shape: f32[1,64], index: 8, kind: input, shape index: {}]   ;;  %s2181_s9 = inlined_call_operand.vmem [shape: f32[32,64], index: 9, kind: input, shape index: {}]   ;;  %s2182_s10 = inlined_call_operand.vmem [shape: f32[1,64], index: 10, kind: input, shape index: {}]   ;;  %s2183_s11 = inlined_call_operand.vmem [shape: f32[64,12], index: 11, kind: input, shape index: {}]   ;;  %s2184_s12 = inlined_call_operand.vmem [shape: f32[1,12], index: 12, kind: input, shape index: {}]   ;;  %s2185_s13 = inlined_call_operand.vmem [shape: f32[2,1,64], index: 13, kind: output, shape index: {0}]   ;;  %s2186_s14 = inlined_call_operand.vmem [shape: f32[2,1,12], index: 14, kind: output, shape index: {1}]  }
   0x1 LB: > { %s1509_s30 = sadd.s32 4294967295, %s1875_s29   ;;  %p1513_p0 = scmp.ge.s32.totalorder %s1875_s29, 1  ;;  %s1875_s29 = sphi %s1956_s29, %s25_s29  }
   0x2   : > { %p423_p1 = scmp.lt.s32.totalorder %s1875_s29, 3 }
   0x4   : > { %p424_p2 = pnand %p1513_p0, %p423_p1 }
   0x5   : > { %v496_v0 = vld [vmem:[%s2174_s2] sm:$0xf] (!%p424_p2)  ;;  %vm529_vm0 = vcmask (!%p424_p2), 1043456   ;;  %p473_p3 = scmp.lt.s32.totalorder (!%p424_p2), %s1509_s30, 1  ;;  %v1877_v1 = vmov (!%p424_p2), 0.0|0.0   ;;  %v643_v3 = vld [vmem:[%s2177_s5 + $0x8] sm:$0xff] (!%p424_p2)  ;;  %v720_v53 = vlaneseq (!%p424_p2) }
   0x6   : > { %427 = sbr.rel (%p424_p2) target bundleno = 1662 (0x67e), region = 72  ;;  %1620 = vmatprep.subr.msk.mxu0 (!%p424_p2), %vm529_vm0, %v496_v0  ;;  %1817 = vmatprep.subr.msk.mxu1 (!%p424_p2), %vm529_vm0, %v496_v0  ;;  %v642_v2 = vld [vmem:[%s2177_s5] sm:$0xff] (!%p424_p2)  ;;  %vm504_vm1 = vcmask (!%p424_p2), 31744   ;;  %v644_v4 = vld [vmem:[%s2177_s5 + $0x10] sm:$0xff] (!%p424_p2)  ;;  %v645_v11 = vld [vmem:[%s2177_s5 + $0x18] sm:$0xff] (!%p424_p2)  ;;  %vm1878_vm2 = vmmov (!%p424_p2), 0  }
   0x7   : > { %1621 = vmatpush3.msk.msra.mxu0 (!%p424_p2), %vm529_vm0, %v496_v0  ;;  %1818 = vmatpush3.msk.msra.mxu1 (!%p424_p2), %vm529_vm0, %v496_v0  ;;  %v1754_v8 = vpack.c.bf16 (!%p424_p2), %v643_v3, %v642_v2  ;;  %v638_v13 = vld [vmem:[%s2176_s4] sm:$0xff] (!%p424_p2)  ;;  %v639_v14 = vld [vmem:[%s2176_s4 + $0x8] sm:$0xff] (!%p424_p2)  ;;  %v1757_v17 = vpack.c.bf16 (!%p424_p2), %v645_v11, %v644_v4  ;;  %v1879_v19 = vmov (!%p424_p2), 0.0   ;;  %vm646_vm3 = vcmask (!%p424_p2), 261120   ;;  %v640_v21 = vld [vmem:[%s2176_s4 + $0x10] sm:$0xff] (!%p424_p2)  ;;  %s1880_s18 = smov (!%p424_p2), 32  }
   0x8   : > { %1753 = vmatprep.subr.bf16.mxu1 (!%p424_p2), %v1877_v1  ;;  %v1759_v18 = vpack.c.bf16 (!%p424_p2), %v639_v14, %v638_v13  ;;  %v641_v22 = vld [vmem:[%s2176_s4 + $0x18] sm:$0xff] (!%p424_p2)  ;;  %v1516_v24 = vld [vmem:[%s2175_s3] ss:$0 sm:$0xff] (!%p424_p2)  ;;  %v862_v48 = vld [vmem:[%s2178_s6 + $0x8] sm:$0xff] (!%p424_p2)  ;;  %v721_v54 = vshrl.u32 (!%p424_p2), %v720_v53, 7  ;;  %vm994_vm4 = vcmask (!%p424_p2), 15360  }
   0x9   : > { %v1763_v23 = vpack.c.bf16 (!%p424_p2), %v641_v22, %v640_v21  ;;  %v861_v47 = vld [vmem:[%s2178_s6] sm:$0xff] (!%p424_p2)  ;;  %v863_v50 = vld [vmem:[%s2178_s6 + $0x10] sm:$0xff] (!%p424_p2)  ;;  %v864_v51 = vld [vmem:[%s2178_s6 + $0x18] sm:$0xff] (!%p424_p2)  ;;  %vm1102_vm5 = vcmask (!%p424_p2), 523264   ;;  %vm1265_vm6 = vcmask (!%p424_p2), 516096   ;;  %vm1426_vm7 = vcmask (!%p424_p2), 90112  }
   0xa   : > { %v1767_v49 = vpack.c.bf16 (!%p424_p2), %v862_v48, %v861_v47  ;;  %v1771_v52 = vpack.c.bf16 (!%p424_p2), %v864_v51, %v863_v50  ;;  %v722_v55 = vsub.s32 (!%p424_p2), 0, %v721_v54 }
   0xc   : > { %1768 = vmatprep.subr.bf16.mxu0 (!%p424_p2), %v1767_v49 }
   0xd   : > { %s2188_s30 = smov (!%p473_p3, %s1509_s30), 1 }
   0xe   : > { %s1549_s21 = sshll.u32 %s2188_s30, 6  ;;  %s483_s27 = scalar_lea.vmem %s2185_s13, %s2188_s30 }
   0xf   : > { %s477_s24 = scalar_lea.vmem %s2172_s0, %s1549_s21  ;;  %s480_s21 = scalar_lea.vmem %s2173_s1, %s2188_s30 }
  0x10   : > { %v487_v5 = vld [vmem:[%s477_s24] sm:$0xff]  ;;  %v488_v6 = vld [vmem:[%s477_s24 + $0x8] sm:$0xff]  ;;  %v489_v7 = vld [vmem:[%s477_s24 + $0x10] sm:$0xff] }
  0x11   : > { %1622 = vmatprep.mubr.msk.f32.mxu0 %vm504_vm1, %v487_v5  ;;  %v491_v9 = vld [vmem:[%s477_s24 + $0x20] sm:$0xff]  ;;  %v492_v10 = vld [vmem:[%s477_s24 + $0x28] sm:$0xff]  ;;  %v493_v12 = vld [vmem:[%s477_s24 + $0x30] sm:$0xff] }
  0x12   : > { %1623 = vmatmul.mubr.msk.f32.vlgmr.msra.gmra.mrb[0].mxu0 %vm504_vm1, %v488_v6  ;;  %1628 = vmatprep.mubr.msk.f32.mxu1 %vm504_vm1, %v491_v9  ;;  %v490_v15 = vld [vmem:[%s477_s24 + $0x18] sm:$0xff]  ;;  %v2007_v20 = vld [vmem:[%s480_s21] sm:$0x1] }
  0x13   : > { %1625 = vmatprep.mubr.msk.f32.mxu0 %vm504_vm1, %v489_v7  ;;  %1629 = vmatmul.mubr.msk.f32.vlgmr.msra.gmra.mrb[0].mxu1 %vm504_vm1, %v492_v10  ;;  %v494_v16 = vld [vmem:[%s477_s24 + $0x38] sm:$0xff] }
  0x14   : > { %1631 = vmatprep.mubr.msk.f32.mxu1 %vm504_vm1, %v493_v12  ;;  %1755 = vmatpush3.bf16.msra.mxu1 %v1754_v8 }
  0x15   : > { %1756 = vmatprep.subr.bf16.mxu1 %v1877_v1  ;;  %1770 = vmatpush3.bf16.msra.mxu0 %v1767_v49 }
  0x16   : > { %1626 = vmatmul.mubr.msk.f32.gmra.mrb[2].mxu0 %vm504_vm1, %v490_v15  ;;  %1772 = vmatprep.subr.bf16.mxu0 %v1771_v52 }
  0x17   : > { %1632 = vmatmul.mubr.msk.f32.gmra.mrb[2].mxu1 %vm504_vm1, %v494_v16 }
  0x18   : > { %1758 = vmatpush3.bf16.msra.mxu1 %v1757_v17  ;;  %1642 = vmatprep.mubr.msk.f32.mxu1 %vm1878_vm2, %v1879_v19 }
  0x19   : > { %1760 = vmatprep.subr.bf16.mxu1 %v1759_v18  ;;  %1774 = vmatpush3.bf16.msra.mxu0 %v1771_v52 }
  0x1a   : > { %1787 = vmatprep.subr.bf16.mxu0 %v1877_v1 }
  0x1b   : > { %1643 = vmatmul.mubr.msk.f32.vlgmr.msra.gmra.mrb[4].mxu1 %vm646_vm3, %v2007_v20 }
  0x1c   : > { %1762 = vmatpush3.bf16.msra.mxu1 %v1759_v18 }
  0x1d   : > { %1764 = vmatprep.subr.bf16.mxu1 %v1763_v23 }
  0x20   : > { %1766 = vmatpush3.bf16.msra.mxu1 %v1763_v23 }
  0x21   : > { %1775 = vmatprep.subr.bf16.mxu1 %v1877_v1 }
  0xe5   : > { %v1624_v25 = vpop.f32.mrb[0].mxu0 }
  0xe6   : > { %v605_v26 = vadd.f32 %v1624_v25, %v1516_v24  ;;  %v599_v27 = vpop.f32.mrb[1].mxu0  ;;  %v1630_v28 = vpop.f32.mrb[0].mxu1 }
  0xe7   : > { %v600_v29 = vadd.f32 %v1516_v24, %v599_v27  ;;  %v625_v30 = vadd.f32 %v1630_v28, %v1516_v24  ;;  %v619_v31 = vpop.f32.mrb[1].mxu1 }
  0xe8   : > { %v620_v32 = vadd.f32 %v1516_v24, %v619_v31 }
  0xe9   : > { %v1776_v33 = vpack.c.bf16 %v605_v26, %v600_v29  ;;  %v1627_v34 = vpop.f32.mrb[2].mxu0  ;;  %1653 = vmatprep.mubr.msk.f32.mxu1 %vm646_vm3, %v600_v29 }
  0xea   : > { %v615_v35 = vadd.f32 %v1627_v34, %v1516_v24  ;;  %v609_v36 = vpop.f32.mrb[3].mxu0  ;;  %1654 = vmatmul.mubr.msk.f32.vlgmr.msra.gmra.mrb[6].mxu1 %vm646_vm3, %v605_v26  ;;  %v1782_v37 = vpack.c.bf16 %v625_v30, %v620_v32  ;;  %v1633_v38 = vpop.f32.mrb[2].mxu1 }
  0xeb   : > { %v610_v39 = vadd.f32 %v1516_v24, %v609_v36  ;;  %1777 = vmatpush3.bf16.msra.mxu1 %v1776_v33  ;;  %v635_v40 = vadd.f32 %v1633_v38, %v1516_v24  ;;  %v629_v41 = vpop.f32.mrb[3].mxu1 }
  0xec   : > { %1778 = vmatprep.subr.bf16.mxu1 %v1877_v1  ;;  %v630_v42 = vadd.f32 %v1516_v24, %v629_v41 }
  0xed   : > { %v1779_v43 = vpack.c.bf16 %v615_v35, %v610_v39  ;;  %1656 = vmatprep.mubr.msk.f32.mxu1 %vm646_vm3, %v610_v39 }
  0xee   : > { %1657 = vmatmul.mubr.msk.f32.gmra.mrb[8].mxu1 %vm646_vm3, %v615_v35  ;;  %v1785_v44 = vpack.c.bf16 %v635_v40, %v630_v42  ;;  %v716_v45 = vpop.f32.mrb[4].mxu1 }
  0xef   : > { %1780 = vmatpush3.bf16.msra.mxu1 %v1779_v43  ;;  %1659 = vmatprep.mubr.msk.f32.mxu1 %vm646_vm3, %v620_v32  ;;  %v1644_v46 = vpop.f32.mrb[5].mxu1  ;;  %v723_v56 = vrot.slane %v716_v45, %v722_v55 }
  0xf0   : > { %1781 = vmatprep.subr.bf16.mxu1 %v1877_v1 }
  0xf2   : > { %1660 = vmatmul.mubr.msk.f32.gmra.mrb[10].mxu1 %vm646_vm3, %v625_v30 }
  0xf3   : > { %1783 = vmatpush3.bf16.msra.mxu1 %v1782_v37  ;;  %1662 = vmatprep.mubr.msk.f32.mxu1 %vm646_vm3, %v630_v42 }
  0xf4   : > { %1784 = vmatprep.subr.bf16.mxu1 %v1877_v1 }
  0xf6   : > { %1663 = vmatmul.mubr.msk.f32.gmra.mrb[12].mxu1 %vm646_vm3, %v635_v40 }
  0xf7   : > { %1786 = vmatpush3.bf16.msra.mxu1 %v1785_v44  ;;  %1701 = vmatprep.mubr.msk.f32.mxu1 %vm1878_vm2, %v1879_v19 }
  0xf8   : > { %1799 = vmatprep.subr.bf16.mxu1 %v1877_v1 }
 0x1bd   : > { %v1655_v57 = vpop.f32.mrb[6].mxu1 }
 0x1be   : > { %v820_v58 = vadd.f32 %v1655_v57, %v723_v56  ;;  %v814_v59 = vpop.f32.mrb[7].mxu1 }
 0x1bf   : > { %v815_v60 = vadd.f32 %v814_v59, %v723_v56 }
 0x1c1   : > { %1831 = vtanh.f32 %v815_v60  ;;  %v1658_v61 = vpop.f32.mrb[8].mxu1 }
 0x1c2   : > { %1833 = vtanh.f32 %v820_v58  ;;  %v830_v62 = vadd.f32 %v1658_v61, %v723_v56  ;;  %v824_v63 = vpop.f32.mrb[9].mxu1 }
 0x1c3   : > { %v825_v0 = vadd.f32 %v824_v63, %v723_v56 }
 0x1c5   : > { %1835 = vtanh.f32 %v825_v0  ;;  %v1661_v2 = vpop.f32.mrb[10].mxu1 }
 0x1c6   : > { %1837 = vtanh.f32 %v830_v62  ;;  %v840_v3 = vadd.f32 %v1661_v2, %v723_v56  ;;  %v834_v4 = vpop.f32.mrb[11].mxu1 }
 0x1c7   : > { %v835_v5 = vadd.f32 %v834_v4, %v723_v56 }
 0x1c9   : > { %1839 = vtanh.f32 %v835_v5  ;;  %v1664_v6 = vpop.f32.mrb[12].mxu1 }
 0x1ca   : > { %1841 = vtanh.f32 %v840_v3  ;;  %v850_v7 = vadd.f32 %v1664_v6, %v723_v56  ;;  %v844_v8 = vpop.f32.mrb[13].mxu1 }
 0x1cb   : > { %v1832_v9 = vpop.eup %1831  ;;  %v845_v10 = vadd.f32 %v844_v8, %v723_v56 }
 0x1cc   : > { %v1834_v11 = vpop.eup %1833  ;;  %1673 = vmatprep.mubr.msk.f32.mxu0 %vm646_vm3, %v1832_v9 }
 0x1cd   : > { %1843 = vtanh.f32 %v845_v10  ;;  %1674 = vmatmul.mubr.msk.f32.vlgmr.msra.gmra.mrb[4].mxu0 %vm646_vm3, %v1834_v11 }
 0x1ce   : > { %1845 = vtanh.f32 %v850_v7 }
 0x1cf   : > { %v1836_v12 = vpop.eup %1835 }
 0x1d0   : > { %v1838_v13 = vpop.eup %1837  ;;  %1676 = vmatprep.mubr.msk.f32.mxu0 %vm646_vm3, %v1836_v12 }
 0x1d1   : > { %1677 = vmatmul.mubr.msk.f32.gmra.mrb[6].mxu0 %vm646_vm3, %v1838_v13 }
 0x1d3   : > { %v1840_v14 = vpop.eup %1839 }
 0x1d4   : > { %v1842_v15 = vpop.eup %1841  ;;  %1679 = vmatprep.mubr.msk.f32.mxu0 %vm646_vm3, %v1840_v14 }
 0x1d5   : > { %1680 = vmatmul.mubr.msk.f32.gmra.mrb[8].mxu0 %vm646_vm3, %v1842_v15 }
 0x1d7   : > { %v1844_v16 = vpop.eup %1843 }
 0x1d8   : > { %v1846_v17 = vpop.eup %1845  ;;  %1682 = vmatprep.mubr.msk.f32.mxu0 %vm646_vm3, %v1844_v16 }
 0x1d9   : > { %1683 = vmatmul.mubr.msk.f32.gmra.mrb[10].mxu0 %vm646_vm3, %v1846_v17 }
 0x1da   : > { %1720 = vmatprep.mubr.msk.f32.mxu0 %vm1878_vm2, %v1879_v19 }
 0x2a0   : > { %v1675_v18 = vpop.f32.mrb[4].mxu0 }
 0x2a1   : > { %v955_v21 = vpop.f32.mrb[5].mxu0  ;;  %v996_v25 = vsel %vm994_vm4, %v1675_v18, -inf }
 0x2a2   : > { %v995_v28 = vsel %vm994_vm4, %v955_v21, -inf }
 0x2a4   : > { %v1678_v22 = vpop.f32.mrb[6].mxu0 }
 0x2a5   : > { %v965_v23 = vpop.f32.mrb[7].mxu0  ;;  %v998_v33 = vsel %vm994_vm4, %v1678_v22, -inf }
 0x2a6   : > { %v997_v37 = vsel %vm994_vm4, %v965_v23, -inf }
 0x2a8   : > { %v1681_v24 = vpop.f32.mrb[8].mxu0 }
 0x2a9   : > { %v1001_v26 = vsel %vm994_vm4, %v1681_v24, -inf  ;;  %v975_v27 = vpop.f32.mrb[9].mxu0 }
 0x2aa   : > { %v1002_v29 = vmax.f32 %v996_v25, %v1001_v26  ;;  %v999_v30 = vsel %vm994_vm4, %v975_v27, -inf }
 0x2ab   : > { %v1000_v31 = vmax.f32 %v995_v28, %v999_v30 }
 0x2ac   : > { %v1684_v32 = vpop.f32.mrb[10].mxu0 }
 0x2ad   : > { %v1007_v34 = vmax.f32 %v1000_v31, %v1002_v29  ;;  %v1005_v35 = vsel %vm994_vm4, %v1684_v32, -inf  ;;  %v985_v36 = vpop.f32.mrb[11].mxu0 }
 0x2ae   : > { %v1006_v38 = vmax.f32 %v998_v33, %v1005_v35  ;;  %v1003_v39 = vsel %vm994_vm4, %v985_v36, -inf }
 0x2af   : > { %v1004_v40 = vmax.f32 %v997_v37, %v1003_v39 }
 0x2b1   : > { %v1008_v41 = vmax.f32 %v1004_v40, %v1006_v38 }
 0x2b3   : > { %v1009_v42 = vmax.f32 %v1007_v34, %v1008_v41 }
 0x2b5   : > { %v1010_v43 = vrot.slane %v1009_v42, 4 }
 0x2b7   : > { %v1011_v44 = vmax.f32 %v1009_v42, %v1010_v43  ;;  %v1182_v43 = vld [vmem:[%s2179_s7] sm:$0xff] }
 0x2b9   : > { %v1012_v45 = vrot.slane %v1011_v44, 2 }
 0x2bb   : > { %v1013_v46 = vmax.f32 %v1011_v44, %v1012_v45  ;;  %v1183_v44 = vld [vmem:[%s2179_s7 + $0x8] sm:$0xff]  ;;  %v1184_v45 = vld [vmem:[%s2179_s7 + $0x10] sm:$0xff] }
 0x2bd   : > { %v1014_v47 = vrot.slane %v1013_v46, 1 }
 0x2bf   : > { %v1015_v48 = vmax.f32 %v1013_v46, %v1014_v47  ;;  %v1788_v46 = vpack.c.bf16 %v1183_v44, %v1182_v43  ;;  %v1185_v47 = vld [vmem:[%s2179_s7 + $0x18] sm:$0xff] }
 0x2c1   : > { %v1022_v49 = vsub.f32 %v985_v36, %v1015_v48  ;;  %v1023_v50 = vsub.f32 %v1684_v32, %v1015_v48  ;;  %v1016_v51 = vsub.f32 %v955_v21, %v1015_v48  ;;  %v1017_v52 = vsub.f32 %v1675_v18, %v1015_v48  ;;  %1789 = vmatpush3.bf16.msra.mxu0 %v1788_v46 }
 0x2c2   : > { %v1018_v53 = vsub.f32 %v965_v23, %v1015_v48  ;;  %v1019_v54 = vsub.f32 %v1678_v22, %v1015_v48  ;;  %v1020_v55 = vsub.f32 %v975_v27, %v1015_v48  ;;  %v1021_v56 = vsub.f32 %v1681_v24, %v1015_v48  ;;  %v1267_v48 = vld [vmem:[%s2181_s9] sm:$0xff]  ;;  %1790 = vmatprep.subr.bf16.mxu0 %v1877_v1 }
 0x2c3   : > { %v1024_v57 = vmul.f32 1.442695, %v1016_v51  ;;  %v1026_v58 = vmul.f32 1.442695, %v1017_v52  ;;  %v1036_v63 = vmul.f32 1.442695, %v1022_v49 }
 0x2c4   : > { %v1028_v59 = vmul.f32 1.442695, %v1018_v53  ;;  %v1030_v60 = vmul.f32 1.442695, %v1019_v54  ;;  %v1032_v61 = vmul.f32 1.442695, %v1020_v55 }
 0x2c5   : > { %1847 = vpow2.f32 %v1024_v57  ;;  %v1034_v62 = vmul.f32 1.442695, %v1021_v56  ;;  %v1038_v0 = vmul.f32 1.442695, %v1023_v50  ;;  %v1268_v49 = vld [vmem:[%s2181_s9 + $0x8] sm:$0xff]  ;;  %v1791_v50 = vpack.c.bf16 %v1185_v47, %v1184_v45  ;;  %v1269_v52 = vld [vmem:[%s2181_s9 + $0x10] sm:$0xff] }
 0x2c6   : > { %1849 = vpow2.f32 %v1026_v58  ;;  %v1800_v51 = vpack.c.bf16 %v1268_v49, %v1267_v48  ;;  %v1270_v53 = vld [vmem:[%s2181_s9 + $0x18] sm:$0xff]  ;;  %v1186_v54 = vld [vmem:[%s2179_s7 + $0x20] sm:$0xff]  ;;  %v1187_v55 = vld [vmem:[%s2179_s7 + $0x28] sm:$0xff] }
 0x2c7   : > { %1851 = vpow2.f32 %v1028_v59  ;;  %v1803_v56 = vpack.c.bf16 %v1270_v53, %v1269_v52  ;;  %1792 = vmatpush3.bf16.msra.mxu0 %v1791_v50  ;;  %v1794_v57 = vpack.c.bf16 %v1187_v55, %v1186_v54  ;;  %v1188_v58 = vld [vmem:[%s2179_s7 + $0x30] sm:$0xff]  ;;  %v1189_v59 = vld [vmem:[%s2179_s7 + $0x38] sm:$0xff] }
 0x2c8   : > { %1853 = vpow2.f32 %v1030_v60  ;;  %1793 = vmatprep.subr.bf16.mxu0 %v1877_v1  ;;  %v1797_v60 = vpack.c.bf16 %v1189_v59, %v1188_v58 }
 0x2c9   : > { %1855 = vpow2.f32 %v1032_v61 }
 0x2ca   : > { %1857 = vpow2.f32 %v1034_v62 }
 0x2cb   : > { %1859 = vpow2.f32 %v1036_v63  ;;  %1795 = vmatpush3.bf16.msra.mxu0 %v1794_v57 }
 0x2cc   : > { %1861 = vpow2.f32 %v1038_v0  ;;  %1796 = vmatprep.subr.bf16.mxu0 %v1877_v1 }
 0x2cf   : > { %v1848_v2 = vpop.eup %1847  ;;  %1798 = vmatpush3.bf16.msra.mxu0 %v1797_v60 }
 0x2d0   : > { %v1850_v3 = vpop.eup %1849  ;;  %v1040_v4 = vsel %vm994_vm4, %v1848_v2, 0.0  ;;  %1805 = vmatprep.subr.bf16.mxu0 %v1877_v1 }
 0x2d1   : > { %v1852_v5 = vpop.eup %1851  ;;  %v1041_v6 = vsel %vm994_vm4, %v1850_v3, 0.0 }
 0x2d2   : > { %v1854_v7 = vpop.eup %1853  ;;  %v1042_v8 = vadd.f32 %v1041_v6, %v1040_v4  ;;  %v1043_v9 = vsel %vm994_vm4, %v1852_v5, 0.0 }
 0x2d3   : > { %v1856_v10 = vpop.eup %1855  ;;  %v1045_v12 = vsel %vm994_vm4, %v1854_v7, 0.0 }
 0x2d4   : > { %v1044_v11 = vadd.f32 %v1043_v9, %v1042_v8  ;;  %v1858_v13 = vpop.eup %1857  ;;  %v1047_v15 = vsel %vm994_vm4, %v1856_v10, 0.0  ;;  %v1348_v9 = vld [vmem:[%s2183_s11 + $0x20] sm:$0xff] }
 0x2d5   : > { %v1860_v16 = vpop.eup %1859  ;;  %v1049_v18 = vsel %vm994_vm4, %v1858_v13, 0.0 }
 0x2d6   : > { %v1046_v14 = vadd.f32 %v1045_v12, %v1044_v11  ;;  %v1862_v21 = vpop.eup %1861  ;;  %v1051_v23 = vsel %vm994_vm4, %v1860_v16, 0.0  ;;  %v1350_v12 = vld [vmem:[%s2183_s11 + $0x30] sm:$0xff] }
 0x2d7   : > { %v1053_v25 = vsel %vm994_vm4, %v1862_v21, 0.0 }
 0x2d8   : > { %v1048_v17 = vadd.f32 %v1047_v15, %v1046_v14  ;;  %v1271_v15 = vld [vmem:[%s2182_s10] sm:$0x1] }
 0x2da   : > { %v1050_v22 = vadd.f32 %v1049_v18, %v1048_v17 }
 0x2dc   : > { %v1052_v24 = vadd.f32 %v1051_v23, %v1050_v22 }
 0x2de   : > { %v1054_v26 = vadd.f32 %v1053_v25, %v1052_v24  ;;  %v1352_v25 = vld [vmem:[%s2184_s12] sm:$0x1] }
 0x2e0   : > { %v1055_v27 = vrot.slane %v1054_v26, 4 }
 0x2e2   : > { %v1056_v28 = vadd.f32 %v1055_v27, %v1054_v26 }
 0x2e4   : > { %v1057_v29 = vrot.slane %v1056_v28, 2 }
 0x2e6   : > { %v1058_v30 = vadd.f32 %v1057_v29, %v1056_v28 }
 0x2e8   : > { %v1059_v31 = vrot.slane %v1058_v30, 1 }
 0x2ea   : > { %v1060_v32 = vadd.f32 %v1059_v31, %v1058_v30 }
 0x2ec   : > { %1863 = vrcp.f32 %v1060_v32 }
 0x2f6   : > { %v1864_v33 = vpop.eup %1863 }
 0x2f7   : > { %v1062_v34 = vmul.f32 %v1864_v33, %v1848_v2  ;;  %v1063_v35 = vmul.f32 %v1864_v33, %v1850_v3  ;;  %v1064_v36 = vmul.f32 %v1864_v33, %v1852_v5  ;;  %v1065_v37 = vmul.f32 %v1864_v33, %v1854_v7  ;;  %v1345_v5 = vld [vmem:[%s2183_s11 + $0x8] sm:$0xff]  ;;  %v1346_v7 = vld [vmem:[%s2183_s11 + $0x10] sm:$0xff] }
 0x2f8   : > { %v1066_v38 = vmul.f32 %v1864_v33, %v1856_v10  ;;  %v1067_v39 = vmul.f32 %v1864_v33, %v1858_v13  ;;  %v1068_v40 = vmul.f32 %v1864_v33, %v1860_v16  ;;  %v1069_v41 = vmul.f32 %v1864_v33, %v1862_v21  ;;  %v1349_v10 = vld [vmem:[%s2183_s11 + $0x28] sm:$0xff]  ;;  %v1351_v13 = vld [vmem:[%s2183_s11 + $0x38] sm:$0xff] }
 0x2f9   : > { %1070 = vxpose.xlu0.b32.start [1/8] (short) (narrow) %v1062_v34, 8  ;;  %v1812_v11 = vpack.c.bf16 %v1349_v10, %v1348_v9  ;;  %v1815_v14 = vpack.c.bf16 %v1351_v13, %v1350_v12 }
 0x2fd   : > { %1071 = vxpose.xlu0.b32.cont [2/8] (short) (narrow) %v1063_v35, 8 }
 0x301   : > { %1072 = vxpose.xlu0.b32.cont [3/8] (short) (narrow) %v1064_v36, 8 }
 0x305   : > { %1073 = vxpose.xlu0.b32.cont [4/8] (short) (narrow) %v1065_v37, 8 }
 0x309   : > { %1074 = vxpose.xlu0.b32.cont [5/8] (short) (narrow) %v1066_v38, 8 }
 0x30d   : > { %1075 = vxpose.xlu0.b32.cont [6/8] (short) (narrow) %v1067_v39, 8 }
 0x311   : > { %1076 = vxpose.xlu0.b32.cont [7/8] (short) (narrow) %v1068_v40, 8 }
 0x315   : > { %1077 = vxpose.xlu0.b32.end [8/8] (short) (narrow) %v1069_v41, 8 }
 0x379   : > { %v1086_v42 = vpop.trf.xlu0 }
 0x37a   : > { %1702 = vmatmul.mubr.msk.f32.vlgmr.msra.gmra.mrb[14].mxu1 %vm1102_vm5, %v1086_v42 }
 0x37b   : > { %1731 = vmatprep.mubr.msk.f32.mxu1 %vm1878_vm2, %v1879_v19  ;;  %1801 = vmatpush3.bf16.msra.mxu1 %v1800_v51 }
 0x37c   : > { %1802 = vmatprep.subr.bf16.mxu1 %v1877_v1 }
 0x37f   : > { %1804 = vmatpush3.bf16.msra.mxu1 %v1803_v56 }
 0x382   : > { %1732 = vmatmul.mubr.msk.f32.vlgmr.msra.gmra.mrb[16].mxu1 %vm646_vm3, %v2007_v20  ;;  %v1344_v20 = vld [vmem:[%s2183_s11] sm:$0xff] }
 0x383   : > { %v1806_v6 = vpack.c.bf16 %v1345_v5, %v1344_v20 }
 0x44d   : > { %v1172_v61 = vpop.f32.mrb[14].mxu1 }
 0x44e   : > { %v1703_v62 = vpop.f32.mrb[15].mxu1  ;;  %v1177_v63 = vrot.slane %v1172_v61, 1 }
 0x450   : > { %1178 = vrot.lane.b32.xlu1 %v1177_v63, %s1880_s18  ;;  %s486_s18 = scalar_lea.vmem %s2186_s14, %s2188_s30 }
 0x455   : > { %v1338_v0 = vpop.f32.mrb[16].mxu1 }
 0x456   : > { %v1733_v2 = vpop.f32.mrb[17].mxu1  ;;  %v1339_v16 = vadd.f32 %v1338_v0, %v1271_v15 }
 0x458   : > { %1865 = vtanh.f32 %v1339_v16 }
 0x462   : > { %v1866_v22 = vpop.eup %1865 }
 0x4c2   : > { %v1179_v3 = vpop.permute.xlu1 %1178 }
 0x4c3   : > { %v1181_v4 = vsel %vm646_vm3, %v1172_v61, %v1179_v3 }
 0x4c4   : > { %1721 = vmatmul.mubr.msk.f32.vlgmr.msra.gmra.mrb[12].mxu0 %vm1102_vm5, %v1181_v4 }
 0x4c5   : > { %1750 = vmatprep.mubr.msk.f32.mxu0 %vm1878_vm2, %v1879_v19  ;;  %1807 = vmatpush3.bf16.msra.mxu0 %v1806_v6  ;;  %v1347_v19 = vld [vmem:[%s2183_s11 + $0x18] sm:$0xff] }
 0x4c6   : > { %1808 = vmatprep.subr.bf16.mxu0 %v1877_v1  ;;  %v1809_v8 = vpack.c.bf16 %v1347_v19, %v1346_v7 }
 0x4c9   : > { %1810 = vmatpush3.bf16.msra.mxu0 %v1809_v8 }
 0x4ca   : > { %1811 = vmatprep.subr.bf16.mxu0 %v1877_v1 }
 0x4cd   : > { %1813 = vmatpush3.bf16.msra.mxu0 %v1812_v11 }
 0x4ce   : > { %1814 = vmatprep.subr.bf16.mxu0 %v1877_v1  ;;  %v1190_v1 = vld [vmem:[%s2180_s8] sm:$0x1] }
 0x4d1   : > { %1816 = vmatpush3.bf16.msra.mxu0 %v1815_v14 }
 0x597   : > { %v1260_v17 = vpop.f32.mrb[12].mxu0 }
 0x598   : > { %v1261_v18 = vadd.f32 %v1260_v17, %v1190_v1  ;;  %v1722_v21 = vpop.f32.mrb[13].mxu0 }
 0x59a   : > { %1867 = vtanh.f32 %v1261_v18 }
 0x5a4   : > { %v1868_v23 = vpop.eup %1867 }
 0x5a5   : > { %1266 = vst.msk [vmem:[%s483_s27] sm:$0x1] %vm1265_vm6, %v1868_v23  ;;  %v1343_v24 = vmul.f32 %v1868_v23, %v1866_v22 }
 0x5a7   : > { %1751 = vmatmul.mubr.msk.f32.vlgmr.msra.gmra.mrb[14].mxu0 %vm1102_vm5, %v1343_v24 }
 0x67a   : > { %v1422_v26 = vpop.f32.mrb[14].mxu0 }
 0x67b   : > { %v1423_v27 = vadd.f32 %v1422_v26, %v1352_v25  ;;  %v1752_v28 = vpop.f32.mrb[15].mxu0 }
 0x67d   : > { %1427 = vst.msk [vmem:[%s486_s18] sm:$0x1] %vm1426_vm7, %v1423_v27 }
 0x67e PF: > { %s25_s29 = sadd.s32 1, %s1875_s29  }
 0x67f   : > { %p22_p4 = scmp.ge.s32.totalorder %s25_s29, 4  }
 0x681   :  { %24 = sbr.rel (!%p22_p4) target bundleno = 1 (0x1), region = 117 }

</bundles_post_ra>
